<compile_context>
chip_gen: v7x
topology: tpu7x:2x2x1
jax: 0.10.0
libtpu: 0.0.40
codegen_flags: <defaults>
</compile_context>

<pallas_src>
import functools

import jax
import jax.numpy as jnp
from jax.experimental import pallas as pl
from jax.experimental.pallas import tpu as pltpu


def _leaky_relu(x, slope=0.01):  # PyTorch nn.LeakyReLU default slope
    return jnp.where(x > 0, x, slope * x)


def vae_kernel(
    x_ref, eps_ref,
    w1_ref, b1_ref,          # img_2hid   (D, H), (1, H)
    wms_ref, bms_ref,        # fused hid_2mu|hid_2sigma  (H, 2Z), (1, 2Z)
    w3_ref, b3_ref,          # z_2hid     (Z, H), (1, H)
    w4_ref, b4_ref,          # hid_2img   (H, D), (1, D)
    xrec_ref, musig_ref,
):
    cd = w1_ref.dtype  # bf16 compute dtype for MXU operands
    x = x_ref[...]
    z_dim = eps_ref.shape[1]

    # ---- encode ----
    h = _leaky_relu(
        jnp.dot(x.astype(cd), w1_ref[...], preferred_element_type=jnp.float32)
        + b1_ref[...]
    )
    # fused mu|sigma projection: one wide (N = 2Z) MXU pass, lane-dense result
    musig = (
        jnp.dot(h.astype(cd), wms_ref[...], preferred_element_type=jnp.float32)
        + bms_ref[...]
    )
    mu = musig[:, :z_dim]
    sigma = musig[:, z_dim:]

    # ---- reparameterization: z = mu + sigma * eps, eps ~ U[0,1) ----
    z = mu + sigma * eps_ref[...]

    # ---- decode ----
    h2 = _leaky_relu(
        jnp.dot(z.astype(cd), w3_ref[...], preferred_element_type=jnp.float32)
        + b3_ref[...]
    )
    logits = (
        jnp.dot(h2.astype(cd), w4_ref[...], preferred_element_type=jnp.float32)
        + b4_ref[...]
    )

    xrec_ref[...] = jax.nn.sigmoid(logits).astype(xrec_ref.dtype)
    musig_ref[...] = musig.astype(musig_ref.dtype)


def vae_forward(x, eps, params, *, tm=None, compute_dtype=jnp.bfloat16):
    """x: (B, D) f32, eps: (B, Z) f32, params: dict of f32 weights/biases.

    Returns (x_recon, mu, sigma), all f32.
    """
    B, D = x.shape
    Z = eps.shape[1]
    H = params["w1"].shape[1]

    if tm is None:
        tm = min(B, 256)
    assert B % tm == 0 and tm % 8 == 0, "batch must tile into multiples of 8"
    grid = (B // tm,)

    # Fuse mu/sigma projections into one (H, 2Z) weight; cast MXU operands to bf16.
    w1 = params["w1"].astype(compute_dtype)
    wms = jnp.concatenate([params["wmu"], params["wsig"]], axis=1).astype(compute_dtype)
    bms = jnp.concatenate([params["bmu"], params["bsig"]], axis=1)
    w3 = params["w3"].astype(compute_dtype)
    w4 = params["w4"].astype(compute_dtype)
    b1, b3, b4 = params["b1"], params["b3"], params["b4"]

    batch_spec = lambda n: pl.BlockSpec((tm, n), lambda i: (i, 0))
    pinned = lambda shape: pl.BlockSpec(shape, lambda i: (0, 0))  # VMEM-resident weights

    in_specs = [
        batch_spec(D),                     # x
        batch_spec(Z),                     # eps
        pinned((D, H)), pinned((1, H)),    # img_2hid
        pinned((H, 2 * Z)), pinned((1, 2 * Z)),  # fused hid_2mu|hid_2sigma
        pinned((Z, H)), pinned((1, H)),    # z_2hid
        pinned((H, D)), pinned((1, D)),    # hid_2img
    ]
    out_specs = [
        batch_spec(D),          # x_recon
        batch_spec(2 * Z),      # mu|sigma (lane-dense combined output)
    ]
    out_shape = [
        jax.ShapeDtypeStruct((B, D), jnp.float32),
        jax.ShapeDtypeStruct((B, 2 * Z), jnp.float32),
    ]

    # ---- derive a VMEM cap from actual footprints (weights + 2x-buffered tiles) ----
    wbytes = 2 * (
        w1.size * w1.dtype.itemsize + wms.size * wms.dtype.itemsize
        + w3.size * w3.dtype.itemsize + w4.size * w4.dtype.itemsize
        + 4 * (b1.size + bms.size + b3.size + b4.size)
    )
    act_tile_bytes = 4 * tm * (D + Z + D + 2 * Z)        # x, eps, xrec, musig tiles
    interm_bytes = 4 * tm * (H + 2 * Z + H + D)          # h, musig, h2, logits live values
    needed = wbytes + 2 * act_tile_bytes + interm_bytes
    vmem_limit = int(min(max(3 * needed, 8 << 20), 32 << 20))

    flops = 2 * B * (D * H + H * 2 * Z + Z * H + H * D)
    bytes_accessed = (
        x.size * 4 + eps.size * 4 + wbytes // 2
        + out_shape[0].size * 4 + out_shape[1].size * 4
    )
    cost = pl.CostEstimate(
        flops=flops, transcendentals=B * D, bytes_accessed=bytes_accessed
    )

    x_recon, musig = pl.pallas_call(
        vae_kernel,
        grid=grid,
        in_specs=in_specs,
        out_specs=out_specs,
        out_shape=out_shape,
        compiler_params=pltpu.CompilerParams(
            dimension_semantics=("parallel",),
            vmem_limit_bytes=vmem_limit,
        ),
        cost_estimate=cost,
    )(x, eps, w1, b1, wms, bms, w3, b3, w4, b4)

    mu = musig[:, :Z]
    sigma = musig[:, Z:]
    return x_recon, mu, sigma


def init_params(key, input_dim, h_dim, z_dim):
    """PyTorch-Linear-style init: U(-1/sqrt(fan_in), 1/sqrt(fan_in)), stored (in, out)."""
    def linear(key, fan_in, fan_out):
        kw, kb = jax.random.split(key)
        bound = 1.0 / jnp.sqrt(fan_in)
        w = jax.random.uniform(kw, (fan_in, fan_out), jnp.float32, -bound, bound)
        b = jax.random.uniform(kb, (1, fan_out), jnp.float32, -bound, bound)
        return w, b

    keys = jax.random.split(key, 5)
    w1, b1 = linear(keys[0], input_dim, h_dim)      # img_2hid
    wmu, bmu = linear(keys[1], h_dim, z_dim)        # hid_2mu
    wsig, bsig = linear(keys[2], h_dim, z_dim)      # hid_2sigma
    w3, b3 = linear(keys[3], z_dim, h_dim)          # z_2hid
    w4, b4 = linear(keys[4], h_dim, input_dim)      # hid_2img
    return dict(w1=w1, b1=b1, wmu=wmu, bmu=bmu, wsig=wsig, bsig=bsig,
                w3=w3, b3=b3, w4=w4, b4=b4)


def vae_forward_ref(x, eps, p, compute_dtype=jnp.bfloat16):
    """Pure-JAX reference with matching bf16-operand / f32-accumulate matmuls."""
    cd = compute_dtype

    def mm(a, w):
        return jnp.dot(a.astype(cd), w.astype(cd), preferred_element_type=jnp.float32)

    h = _leaky_relu(mm(x, p["w1"]) + p["b1"])
    mu = mm(h, p["wmu"]) + p["bmu"]
    sigma = mm(h, p["wsig"]) + p["bsig"]
    z = mu + sigma * eps
    h2 = _leaky_relu(mm(z, p["w3"]) + p["b3"])
    return jax.nn.sigmoid(mm(h2, p["w4"]) + p["b4"]), mu, sigma


if __name__ == "__main__":
    # Lane-aligned shapes consistent with the module's Linear stack; B large enough
    # to exercise the batch grid (2 tiles of 128 rows) but still tiny/fast.
    B, INPUT_DIM, H_DIM, Z_DIM = 256, 256, 256, 64
    TM = 128

    key = jax.random.PRNGKey(0)
    k_params, k_x, k_eps = jax.random.split(key, 3)

    params = init_params(k_params, INPUT_DIM, H_DIM, Z_DIM)
    x = jax.random.uniform(k_x, (B, INPUT_DIM), jnp.float32)      # "image" input
    eps = jax.random.uniform(k_eps, (B, Z_DIM), jnp.float32)      # torch.rand_like -> U[0,1)

    run = jax.jit(functools.partial(vae_forward, tm=TM))
    x_recon, mu, sigma = run(x, eps, params)
    jax.block_until_ready((x_recon, mu, sigma))

    # Sanity check against pure-JAX reference (same bf16-operand matmuls).
    xr_ref, mu_ref, sig_ref = vae_forward_ref(x, eps, params)
    assert jnp.allclose(x_recon, xr_ref, atol=1e-2, rtol=1e-2)
    assert jnp.allclose(mu, mu_ref, atol=1e-2, rtol=1e-2)
    assert jnp.allclose(sigma, sig_ref, atol=1e-2, rtol=1e-2)

    print("KERNEL_OK")
</pallas_src>

<mosaic_0001>
module attributes {stable_mosaic.version = 11 : i64} {
  func.func @vae_kernel(%arg0: i32, %arg1: memref<128x256xf32, #tpu.memory_space<vmem>>, %arg2: memref<128x64xf32, #tpu.memory_space<vmem>>, %arg3: memref<256x256xbf16, #tpu.memory_space<vmem>>, %arg4: memref<1x256xf32, #tpu.memory_space<vmem>>, %arg5: memref<256x128xbf16, #tpu.memory_space<vmem>>, %arg6: memref<1x128xf32, #tpu.memory_space<vmem>>, %arg7: memref<64x256xbf16, #tpu.memory_space<vmem>>, %arg8: memref<1x256xf32, #tpu.memory_space<vmem>>, %arg9: memref<256x256xbf16, #tpu.memory_space<vmem>>, %arg10: memref<1x256xf32, #tpu.memory_space<vmem>>, %arg11: memref<128x256xf32, #tpu.memory_space<vmem>>, %arg12: memref<128x128xf32, #tpu.memory_space<vmem>>) attributes {dimension_semantics = [#tpu.dimension_semantics<parallel>], iteration_bounds = array<i64: 2>, scalar_prefetch = 0 : i64, scratch_operands = 0 : i64, tpu.core_type = #tpu.core_type<tc>, window_params = [{transform_indices = @transform_0, window_bounds = array<i64: 128, 256>}, {transform_indices = @transform_1, window_bounds = array<i64: 128, 64>}, {pipeline_mode = #tpu.pipeline_mode<synchronous>, transform_indices = @transform_2, window_bounds = array<i64: 256, 256>}, {pipeline_mode = #tpu.pipeline_mode<synchronous>, transform_indices = @transform_3, window_bounds = array<i64: 1, 256>}, {pipeline_mode = #tpu.pipeline_mode<synchronous>, transform_indices = @transform_4, window_bounds = array<i64: 256, 128>}, {pipeline_mode = #tpu.pipeline_mode<synchronous>, transform_indices = @transform_5, window_bounds = array<i64: 1, 128>}, {pipeline_mode = #tpu.pipeline_mode<synchronous>, transform_indices = @transform_6, window_bounds = array<i64: 64, 256>}, {pipeline_mode = #tpu.pipeline_mode<synchronous>, transform_indices = @transform_7, window_bounds = array<i64: 1, 256>}, {pipeline_mode = #tpu.pipeline_mode<synchronous>, transform_indices = @transform_8, window_bounds = array<i64: 256, 256>}, {pipeline_mode = #tpu.pipeline_mode<synchronous>, transform_indices = @transform_9, window_bounds = array<i64: 1, 256>}, {transform_indices = @transform_10, window_bounds = array<i64: 128, 256>}, {transform_indices = @transform_11, window_bounds = array<i64: 128, 128>}]} {
    %c0 = arith.constant 0 : index
    %c0_0 = arith.constant 0 : index
    %0 = vector.load %arg1[%c0, %c0_0] : memref<128x256xf32, #tpu.memory_space<vmem>>, vector<128x256xf32>
    %1 = arith.truncf %0 : vector<128x256xf32> to vector<128x256xbf16>
    %c0_1 = arith.constant 0 : index
    %c0_2 = arith.constant 0 : index
    %2 = vector.load %arg3[%c0_1, %c0_2] : memref<256x256xbf16, #tpu.memory_space<vmem>>, vector<256x256xbf16>
    %cst = arith.constant dense<0.000000e+00> : vector<128x256xf32>
    %3 = tpu.matmul %1, %2, %cst {dimension_numbers = #tpu.dot_dimension_numbers<[1], [0], [0], [1], [0, 0, 1, 1], [], []>} : vector<128x256xbf16>, vector<256x256xbf16>, vector<128x256xf32> -> vector<128x256xf32>
    %c0_3 = arith.constant 0 : index
    %c0_4 = arith.constant 0 : index
    %4 = vector.load %arg4[%c0_3, %c0_4] : memref<1x256xf32, #tpu.memory_space<vmem>>, vector<1x256xf32>
    %5 = vector.broadcast %4 : vector<1x256xf32> to vector<128x256xf32>
    %6 = arith.addf %3, %5 : vector<128x256xf32>
    %cst_5 = arith.constant 0.000000e+00 : f32
    %7 = vector.broadcast %cst_5 : f32 to vector<128x256xf32>
    %8 = arith.cmpf ogt, %6, %7 : vector<128x256xf32>
    %cst_6 = arith.constant 0.00999999977 : f32
    %9 = vector.broadcast %cst_6 : f32 to vector<128x256xf32>
    %10 = arith.mulf %9, %6 : vector<128x256xf32>
    %11 = arith.select %8, %6, %10 : vector<128x256xi1>, vector<128x256xf32>
    %12 = arith.truncf %11 : vector<128x256xf32> to vector<128x256xbf16>
    %c0_7 = arith.constant 0 : index
    %c0_8 = arith.constant 0 : index
    %13 = vector.load %arg5[%c0_7, %c0_8] : memref<256x128xbf16, #tpu.memory_space<vmem>>, vector<256x128xbf16>
    %cst_9 = arith.constant dense<0.000000e+00> : vector<128x128xf32>
    %14 = tpu.matmul %12, %13, %cst_9 {dimension_numbers = #tpu.dot_dimension_numbers<[1], [0], [0], [1], [0, 0, 1, 1], [], []>} : vector<128x256xbf16>, vector<256x128xbf16>, vector<128x128xf32> -> vector<128x128xf32>
    %c0_10 = arith.constant 0 : index
    %c0_11 = arith.constant 0 : index
    %15 = vector.load %arg6[%c0_10, %c0_11] : memref<1x128xf32, #tpu.memory_space<vmem>>, vector<1x128xf32>
    %16 = vector.broadcast %15 : vector<1x128xf32> to vector<128x128xf32>
    %17 = arith.addf %14, %16 : vector<128x128xf32>
    %18 = vector.extract_strided_slice %17 {offsets = [0, 0], sizes = [128, 64], strides = [1, 1]} : vector<128x128xf32> to vector<128x64xf32>
    %19 = vector.extract_strided_slice %17 {offsets = [0, 64], sizes = [128, 64], strides = [1, 1]} : vector<128x128xf32> to vector<128x64xf32>
    %c0_12 = arith.constant 0 : index
    %c0_13 = arith.constant 0 : index
    %20 = vector.load %arg2[%c0_12, %c0_13] : memref<128x64xf32, #tpu.memory_space<vmem>>, vector<128x64xf32>
    %21 = arith.mulf %19, %20 : vector<128x64xf32>
    %22 = arith.addf %18, %21 : vector<128x64xf32>
    %23 = arith.truncf %22 : vector<128x64xf32> to vector<128x64xbf16>
    %c0_14 = arith.constant 0 : index
    %c0_15 = arith.constant 0 : index
    %24 = vector.load %arg7[%c0_14, %c0_15] : memref<64x256xbf16, #tpu.memory_space<vmem>>, vector<64x256xbf16>
    %cst_16 = arith.constant dense<0.000000e+00> : vector<128x256xf32>
    %25 = tpu.matmul %23, %24, %cst_16 {dimension_numbers = #tpu.dot_dimension_numbers<[1], [0], [0], [1], [0, 0, 1, 1], [], []>} : vector<128x64xbf16>, vector<64x256xbf16>, vector<128x256xf32> -> vector<128x256xf32>
    %c0_17 = arith.constant 0 : index
    %c0_18 = arith.constant 0 : index
    %26 = vector.load %arg8[%c0_17, %c0_18] : memref<1x256xf32, #tpu.memory_space<vmem>>, vector<1x256xf32>
    %27 = vector.broadcast %26 : vector<1x256xf32> to vector<128x256xf32>
    %28 = arith.addf %25, %27 : vector<128x256xf32>
    %cst_19 = arith.constant 0.000000e+00 : f32
    %29 = vector.broadcast %cst_19 : f32 to vector<128x256xf32>
    %30 = arith.cmpf ogt, %28, %29 : vector<128x256xf32>
    %cst_20 = arith.constant 0.00999999977 : f32
    %31 = vector.broadcast %cst_20 : f32 to vector<128x256xf32>
    %32 = arith.mulf %31, %28 : vector<128x256xf32>
    %33 = arith.select %30, %28, %32 : vector<128x256xi1>, vector<128x256xf32>
    %34 = arith.truncf %33 : vector<128x256xf32> to vector<128x256xbf16>
    %c0_21 = arith.constant 0 : index
    %c0_22 = arith.constant 0 : index
    %35 = vector.load %arg9[%c0_21, %c0_22] : memref<256x256xbf16, #tpu.memory_space<vmem>>, vector<256x256xbf16>
    %cst_23 = arith.constant dense<0.000000e+00> : vector<128x256xf32>
    %36 = tpu.matmul %34, %35, %cst_23 {dimension_numbers = #tpu.dot_dimension_numbers<[1], [0], [0], [1], [0, 0, 1, 1], [], []>} : vector<128x256xbf16>, vector<256x256xbf16>, vector<128x256xf32> -> vector<128x256xf32>
    %c0_24 = arith.constant 0 : index
    %c0_25 = arith.constant 0 : index
    %37 = vector.load %arg10[%c0_24, %c0_25] : memref<1x256xf32, #tpu.memory_space<vmem>>, vector<1x256xf32>
    %38 = vector.broadcast %37 : vector<1x256xf32> to vector<128x256xf32>
    %39 = arith.addf %36, %38 : vector<128x256xf32>
    %40 = arith.negf %39 : vector<128x256xf32>
    %41 = math.exp %40 : vector<128x256xf32>
    %cst_26 = arith.constant 1.000000e+00 : f32
    %42 = vector.broadcast %cst_26 : f32 to vector<128x256xf32>
    %43 = arith.addf %42, %41 : vector<128x256xf32>
    %44 = arith.divf %42, %43 : vector<128x256xf32>
    %c0_27 = arith.constant 0 : index
    %c0_28 = arith.constant 0 : index
    %45 = vector.load %arg11[%c0_27, %c0_28] : memref<128x256xf32, #tpu.memory_space<vmem>>, vector<128x256xf32>
    tpu.vector_store %arg11[%c0_27, %c0_28], %44 {strides = array<i32>} : memref<128x256xf32, #tpu.memory_space<vmem>>, vector<128x256xf32>,
    %c0_29 = arith.constant 0 : index
    %c0_30 = arith.constant 0 : index
    %46 = vector.load %arg12[%c0_29, %c0_30] : memref<128x128xf32, #tpu.memory_space<vmem>>, vector<128x128xf32>
    tpu.vector_store %arg12[%c0_29, %c0_30], %17 {strides = array<i32>} : memref<128x128xf32, #tpu.memory_space<vmem>>, vector<128x128xf32>,
    return
  }
  func.func @transform_0(%arg0: i32) -> (i32, i32) {
    %c0_i32 = arith.constant 0 : i32
    %c0_i32_0 = arith.constant 0 : i32
    return %arg0, %c0_i32 : i32, i32
  }
  func.func @transform_1(%arg0: i32) -> (i32, i32) {
    %c0_i32 = arith.constant 0 : i32
    %c0_i32_0 = arith.constant 0 : i32
    return %arg0, %c0_i32 : i32, i32
  }
  func.func @transform_2(%arg0: i32) -> (i32, i32) {
    %c0_i32 = arith.constant 0 : i32
    %c0_i32_0 = arith.constant 0 : i32
    %c0_i32_1 = arith.constant 0 : i32
    return %c0_i32, %c0_i32_0 : i32, i32
  }
  func.func @transform_3(%arg0: i32) -> (i32, i32) {
    %c0_i32 = arith.constant 0 : i32
    %c0_i32_0 = arith.constant 0 : i32
    %c0_i32_1 = arith.constant 0 : i32
    return %c0_i32, %c0_i32_0 : i32, i32
  }
  func.func @transform_4(%arg0: i32) -> (i32, i32) {
    %c0_i32 = arith.constant 0 : i32
    %c0_i32_0 = arith.constant 0 : i32
    %c0_i32_1 = arith.constant 0 : i32
    return %c0_i32, %c0_i32_0 : i32, i32
  }
  func.func @transform_5(%arg0: i32) -> (i32, i32) {
    %c0_i32 = arith.constant 0 : i32
    %c0_i32_0 = arith.constant 0 : i32
    %c0_i32_1 = arith.constant 0 : i32
    return %c0_i32, %c0_i32_0 : i32, i32
  }
  func.func @transform_6(%arg0: i32) -> (i32, i32) {
    %c0_i32 = arith.constant 0 : i32
    %c0_i32_0 = arith.constant 0 : i32
    %c0_i32_1 = arith.constant 0 : i32
    return %c0_i32, %c0_i32_0 : i32, i32
  }
  func.func @transform_7(%arg0: i32) -> (i32, i32) {
    %c0_i32 = arith.constant 0 : i32
    %c0_i32_0 = arith.constant 0 : i32
    %c0_i32_1 = arith.constant 0 : i32
    return %c0_i32, %c0_i32_0 : i32, i32
  }
  func.func @transform_8(%arg0: i32) -> (i32, i32) {
    %c0_i32 = arith.constant 0 : i32
    %c0_i32_0 = arith.constant 0 : i32
    %c0_i32_1 = arith.constant 0 : i32
    return %c0_i32, %c0_i32_0 : i32, i32
  }
  func.func @transform_9(%arg0: i32) -> (i32, i32) {
    %c0_i32 = arith.constant 0 : i32
    %c0_i32_0 = arith.constant 0 : i32
    %c0_i32_1 = arith.constant 0 : i32
    return %c0_i32, %c0_i32_0 : i32, i32
  }
  func.func @transform_10(%arg0: i32) -> (i32, i32) {
    %c0_i32 = arith.constant 0 : i32
    %c0_i32_0 = arith.constant 0 : i32
    return %arg0, %c0_i32 : i32, i32
  }
  func.func @transform_11(%arg0: i32) -> (i32, i32) {
    %c0_i32 = arith.constant 0 : i32
    %c0_i32_0 = arith.constant 0 : i32
    return %arg0, %c0_i32 : i32, i32
  }
}

</mosaic_0001>

<bundles_post_ra>
// kernel: vae_forward.1
= control target key start
LH: loop header
LB: loop body
LE: loop exit
PB: predicated region body
PF: predicated region fallthrough
CT: control target
= control target key end

     0   :  { %s3842_s0 = inlined_call_operand.vmem [shape: f32[256,256], index: 0, kind: input, shape index: {}]   ;;  %s3843_s1 = inlined_call_operand.vmem [shape: f32[256,64], index: 1, kind: input, shape index: {}]   ;;  %s3844_s2 = inlined_call_operand.vmem [shape: bf16[256,256], index: 2, kind: input, shape index: {}]   ;;  %s3845_s3 = inlined_call_operand.vmem [shape: f32[1,256], index: 3, kind: input, shape index: {}]   ;;  %s3846_s4 = inlined_call_operand.vmem [shape: bf16[256,128], index: 4, kind: input, shape index: {}]   ;;  %s3847_s5 = inlined_call_operand.vmem [shape: f32[1,128], index: 5, kind: input, shape index: {}]   ;;  %s3848_s6 = inlined_call_operand.vmem [shape: bf16[64,256], index: 6, kind: input, shape index: {}]   ;;  %s3849_s7 = inlined_call_operand.vmem [shape: f32[1,256], index: 7, kind: input, shape index: {}]   ;;  %s3850_s8 = inlined_call_operand.vmem [shape: bf16[256,256], index: 8, kind: input, shape index: {}]   ;;  %s3851_s9 = inlined_call_operand.vmem [shape: f32[1,256], index: 9, kind: input, shape index: {}]   ;;  %s3852_s10 = inlined_call_operand.hbm [shape: f32[256,256], index: 10, kind: output, shape index: {0}]   ;;  %s3853_s11 = inlined_call_operand.vmem [shape: f32[256,128], index: 11, kind: output, shape index: {1}]  }
   0x1   :  { %3855 = sst [smem:[#allocation7_spill]] %s3842_s0 }
   0x2   :  { %17 = vsyncpa [#allocation3], 0 }
   0x3   :  { %19 = vsyncpa [#allocation3 + $0x1], 0  ;;  %s2981_s17 = smov 0   ;;  %s2983_s18 = smov 0  }
   0x4   :  { %s2985_s19 = smov 0   ;;  %s2987_s20 = smov 0  }
   0x5 LB: > { %3856 = sst [smem:[#allocation5_spill]] %s2910_s19  ;;  %s3002_s21 = sadd.s32 4294967295, %s2914_s20   ;;  %s2914_s20 = sphi %s2987_s20, %s3865_s20   ;;  %s2910_s19 = sphi %s2985_s19, %s3862_s19   ;;  %s2906_s18 = sphi %s2983_s18, %s3864_s18   ;;  %s2902_s17 = sphi %s2981_s17, %s3863_s17  }
   0x6   : > { %s2311_s22 = sadd.s32 4294967294, %s2914_s20   ;;  %s3006_s23 = sadd.s32 1, %s2914_s20  }
   0x7   : > { %s252_s24 = sadd.s32 1, %s2910_s19  ;;  %s249_s25 = ssub.s32 %s2914_s20, %s3006_s23 }
   0x8   : > { %p262_p0 = scmp.ne.s32.totalorder %s2910_s19, %s2906_s18  ;;  %p250_p1 = scmp.eq.s32.totalorder %s249_s25, 0 }
   0x9   : > { %p263_p2 = scmp.eq.s32.totalorder %s3002_s21, 1  ;;  %p268_p3 = scmp.ne.s32.totalorder %s2906_s18, %s2902_s17 }
   0xa   : > { %p269_p4 = scmp.eq.s32.totalorder %s2311_s22, 1  ;;  %p2314_p7 = scmp.ge.s32.totalorder %s2914_s20, 1 }
   0xb   : > { %s3017_s26 = scalar_select %p250_p1, %s2910_s19, %s252_s24  }
   0xc   : > { %p3019_p5 = por %p263_p2, %p262_p0  ;;  %p3023_p6 = por %p269_p4, %p268_p3 }
   0xd   : > { %3857 = sst [smem:[#allocation6_spill]] %s3017_s26  ;;  %p356_p8 = scmp.lt.s32.totalorder %s2914_s20, 3 }
   0xf   : > { %p357_p9 = pnand %p2314_p7, %p356_p8 }
  0x10   : > { %v2600_v0 = vld [vmem:[%s3844_s2 + $0x4] ss:$8 sps:$4 sm:$0xff] (!%p357_p9)   ;;  %v2602_v1 = vld [vmem:[%s3844_s2] ss:$8 sps:$4 sm:$0xff] (!%p357_p9)   ;;  %v2603_v2 = vld [vmem:[%s3844_s2 + $0x14] ss:$8 sps:$4 sm:$0xff] (!%p357_p9)  }
  0x11   : > { %360 = sbr.rel (%p357_p9) target bundleno = 1184 (0x4a0), region = 60  ;;  %680 = vmatprep.subr.bf16.mxu0 (!%p357_p9), %v2600_v0  ;;  %v2605_v3 = vld [vmem:[%s3844_s2 + $0x10] ss:$8 sps:$4 sm:$0xff] (!%p357_p9)   ;;  %v2606_v4 = vld [vmem:[%s3844_s2 + $0x24] ss:$8 sps:$4 sm:$0xff] (!%p357_p9)   ;;  %s2316_s29 = sshll.u32 (!%p357_p9), %s3002_s21, 4 }
  0x12   : > { %681 = vmatpush1.bf16.msra.mxu0 (!%p357_p9), %v2602_v1  ;;  %v2608_v5 = vld [vmem:[%s3844_s2 + $0x20] ss:$8 sps:$4 sm:$0xff] (!%p357_p9)   ;;  %p408_p10 = scmp.lt.s32.totalorder (!%p357_p9), %s2316_s29, 31  ;;  %v2609_v6 = vld [vmem:[%s3844_s2 + $0x34] ss:$8 sps:$4 sm:$0xff] (!%p357_p9)   ;;  %s3860_s0 = sld [smem:[#allocation7_spill]] (!%p357_p9) }
  0x13   : > { %682 = vmatprep.subr.bf16.mxu0 (!%p357_p9), %v2603_v2  ;;  %v2611_v7 = vld [vmem:[%s3844_s2 + $0x30] ss:$8 sps:$4 sm:$0xff] (!%p357_p9)   ;;  %v2612_v8 = vld [vmem:[%s3844_s2 + $0x44] ss:$8 sps:$4 sm:$0xff] (!%p357_p9)   ;;  %v2614_v9 = vld [vmem:[%s3844_s2 + $0x40] ss:$8 sps:$4 sm:$0xff] (!%p357_p9)  }
  0x14   : > { %v2615_v10 = vld [vmem:[%s3844_s2 + $0x54] ss:$8 sps:$4 sm:$0xff] (!%p357_p9)   ;;  %v2617_v11 = vld [vmem:[%s3844_s2 + $0x50] ss:$8 sps:$4 sm:$0xff] (!%p357_p9)   ;;  %v2618_v12 = vld [vmem:[%s3844_s2 + $0x64] ss:$8 sps:$4 sm:$0xff] (!%p357_p9)  }
  0x15   : > { %v2620_v16 = vld [vmem:[%s3844_s2 + $0x60] ss:$8 sps:$4 sm:$0xff] (!%p357_p9)   ;;  %v2621_v17 = vld [vmem:[%s3844_s2 + $0x74] ss:$8 sps:$4 sm:$0xff] (!%p357_p9)   ;;  %v2623_v18 = vld [vmem:[%s3844_s2 + $0x70] ss:$8 sps:$4 sm:$0xff] (!%p357_p9)  }
  0x16   : > { %683 = vmatpush1.bf16.msra.mxu0 (!%p357_p9), %v2605_v3  ;;  %v2624_v19 = vld [vmem:[%s3844_s2 + $0x84] ss:$8 sps:$4 sm:$0xff] (!%p357_p9)   ;;  %v2626_v20 = vld [vmem:[%s3844_s2 + $0x80] ss:$8 sps:$4 sm:$0xff] (!%p357_p9)   ;;  %v2627_v21 = vld [vmem:[%s3844_s2 + $0x94] ss:$8 sps:$4 sm:$0xff] (!%p357_p9)  }
  0x17   : > { %684 = vmatprep.subr.bf16.mxu0 (!%p357_p9), %v2606_v4  ;;  %v2648_v22 = vld [vmem:[%s3846_s4 + $0x40] sm:$0xff] (!%p357_p9)   ;;  %v2629_v23 = vld [vmem:[%s3844_s2 + $0x90] ss:$8 sps:$4 sm:$0xff] (!%p357_p9)   ;;  %v2650_v26 = vld [vmem:[%s3846_s4 + $0x48] sm:$0xff] (!%p357_p9)   ;;  %s2916_s25 = smov (!%p357_p9), 64   ;;  %s2460_s19 = sshll.u32 (!%p357_p9), %s3002_s21, 12 }
  0x18   : > { %s3867_s29 = smov (!%p408_p10, %s2316_s29), 31  ;;  %v2649_v24 = vld [vmem:[%s3846_s4] sm:$0xff]   ;;  %2461 = vmatprep.subr.bf16.mxu1 %v2648_v22  ;;  %v2651_v27 = vld [vmem:[%s3846_s4 + $0x8] sm:$0xff]   ;;  %v2652_v28 = vld [vmem:[%s3846_s4 + $0x50] sm:$0xff]  }
  0x19   : > { %s2458_s12 = sshll.u32 %s3867_s29, 4  ;;  %v2630_v25 = vld [vmem:[%s3844_s2 + $0xa4] ss:$8 sps:$4 sm:$0xff]   ;;  %2462 = vmatpush3.bf16.msra.mxu1 %v2649_v24  ;;  %v2632_v29 = vld [vmem:[%s3844_s2 + $0xa0] ss:$8 sps:$4 sm:$0xff]   ;;  %v2653_v31 = vld [vmem:[%s3846_s4 + $0x10] sm:$0xff]  }
  0x1a   : > { %685 = vmatpush1.bf16.msra.mxu0 %v2608_v5  ;;  %s3069_s26 = scalar_lea.vmem %s3860_s0, %s2458_s12  ;;  %2463 = vmatprep.subr.bf16.mxu1 %v2650_v26  ;;  %v2633_v30 = vld [vmem:[%s3844_s2 + $0xb4] ss:$8 sps:$4 sm:$0xff]   ;;  %v2635_v33 = vld [vmem:[%s3844_s2 + $0xb0] ss:$8 sps:$4 sm:$0xff]   ;;  %v2636_v35 = vld [vmem:[%s3844_s2 + $0xc4] ss:$8 sps:$4 sm:$0xff]   ;;  %s3792_s0 = scalar_lea.hbm %s3852_s10, %s2460_s19 }
  0x1b   : > { %686 = vmatprep.subr.bf16.mxu0 %v2609_v6  ;;  %v429_v13 = vld [vmem:[%s3069_s26 + $0x8] sm:$0xff]  ;;  %v431_v14 = vld [vmem:[%s3069_s26 + $0x18] sm:$0xff]  ;;  %v2656_v36 = vld [vmem:[%s3846_s4 + $0x60] sm:$0xff]   ;;  %s2320_s16 = sshll.u32 %s3867_s29, 3  ;;  %s397_s12 = sand.u32 1, %s2906_s18  }
  0x1c   : > { %v461_v15 = vpack.c.bf16 %v431_v14, %v429_v13  ;;  %v2654_v32 = vld [vmem:[%s3846_s4 + $0x58] sm:$0xff]   ;;  %v2638_v37 = vld [vmem:[%s3844_s2 + $0xc0] ss:$8 sps:$4 sm:$0xff]   ;;  %v2642_v41 = vld [vmem:[%s3844_s2 + $0xe4] ss:$8 sps:$4 sm:$0xff]   ;;  %s3220_s24 = scalar_lea.vmem %s3843_s1, %s2320_s16  ;;  %s3334_s13 = scalar_lea.vmem %s3853_s11, %s2320_s16 }
  0x1d   : > { %2464 = vmatpush3.bf16.msra.mxu1 %v2651_v27  ;;  %v2655_v34 = vld [vmem:[%s3846_s4 + $0x18] sm:$0xff]   ;;  %v2657_v38 = vld [vmem:[%s3846_s4 + $0x20] sm:$0xff]   ;;  %v430_v46 = vld [vmem:[%s3069_s26 + $0x10] sm:$0xff]  ;;  %s2315_s15 = sshll.u32 %s397_s12, 8  ;;  %s3801_s21 = scalar_lea.sflag [#allocation3], %s397_s12 }
  0x1e   : > { %687 = vmatpush1.bf16.msra.mxu0 %v2611_v7  ;;  %712 = vmatprep.mubr.bf16.mxu0 %v461_v15  ;;  %v2639_v39 = vld [vmem:[%s3844_s2 + $0xd4] ss:$8 sps:$4 sm:$0xff]   ;;  %v2641_v40 = vld [vmem:[%s3844_s2 + $0xd0] ss:$8 sps:$4 sm:$0xff]   ;;  %v2644_v42 = vld [vmem:[%s3844_s2 + $0xe0] ss:$8 sps:$4 sm:$0xff]  }
  0x1f   : > { %688 = vmatprep.subr.bf16.mxu0 %v2612_v8  ;;  %2465 = vmatprep.subr.bf16.mxu1 %v2652_v28  ;;  %v2645_v43 = vld [vmem:[%s3844_s2 + $0xf4] ss:$8 sps:$4 sm:$0xff]   ;;  %v2647_v44 = vld [vmem:[%s3844_s2 + $0xf0] ss:$8 sps:$4 sm:$0xff]   ;;  %v428_v45 = vld [vmem:[%s3069_s26] sm:$0xff]  ;;  %s3740_s22 = scalar_lea.vmem [#allocation2], %s2315_s15 }
  0x20   : > { %v433_v47 = vld [vmem:[%s3069_s26 + $0x28] sm:$0xff]  ;;  %v435_v48 = vld [vmem:[%s3069_s26 + $0x38] sm:$0xff]  ;;  %v460_v49 = vpack.c.bf16 %v430_v46, %v428_v45  ;;  %v432_v51 = vld [vmem:[%s3069_s26 + $0x20] sm:$0xff]  ;;  %s2918_s16 = smov [#allocation2]  }
  0x21   : > { %2466 = vmatpush3.bf16.msra.mxu1 %v2653_v31  ;;  %v463_v50 = vpack.c.bf16 %v435_v48, %v433_v47  ;;  %v434_v52 = vld [vmem:[%s3069_s26 + $0x30] sm:$0xff]  ;;  %v437_v53 = vld [vmem:[%s3069_s26 + $0x48] sm:$0xff]  ;;  %v439_v54 = vld [vmem:[%s3069_s26 + $0x58] sm:$0xff]  ;;  %v510_v48 = vlaneseq }
  0x22   : > { %689 = vmatpush1.bf16.msra.mxu0 %v2614_v9  ;;  %2467 = vmatprep.subr.bf16.mxu1 %v2654_v32  ;;  %v462_v55 = vpack.c.bf16 %v434_v52, %v432_v51  ;;  %v465_v56 = vpack.c.bf16 %v439_v54, %v437_v53  ;;  %v436_v57 = vld [vmem:[%s3069_s26 + $0x40] sm:$0xff]  ;;  %v438_v58 = vld [vmem:[%s3069_s26 + $0x50] sm:$0xff]  ;;  %v441_v59 = vld [vmem:[%s3069_s26 + $0x68] sm:$0xff] }
  0x23   : > { %690 = vmatprep.subr.bf16.mxu0 %v2615_v10  ;;  %v443_v60 = vld [vmem:[%s3069_s26 + $0x78] sm:$0xff]  ;;  %v464_v61 = vpack.c.bf16 %v438_v58, %v436_v57  ;;  %v440_v63 = vld [vmem:[%s3069_s26 + $0x60] sm:$0xff]  ;;  %v442_v0 = vld [vmem:[%s3069_s26 + $0x70] sm:$0xff] }
  0x24   : > { %v467_v62 = vpack.c.bf16 %v443_v60, %v441_v59  ;;  %v445_v1 = vld [vmem:[%s3069_s26 + $0x88] sm:$0xff]  ;;  %v447_v2 = vld [vmem:[%s3069_s26 + $0x98] sm:$0xff]  ;;  %v466_v3 = vpack.c.bf16 %v442_v0, %v440_v63  ;;  %v444_v5 = vld [vmem:[%s3069_s26 + $0x80] sm:$0xff] }
  0x25   : > { %2468 = vmatpush3.bf16.msra.mxu1 %v2655_v34  ;;  %v469_v4 = vpack.c.bf16 %v447_v2, %v445_v1  ;;  %v446_v6 = vld [vmem:[%s3069_s26 + $0x90] sm:$0xff]  ;;  %v449_v7 = vld [vmem:[%s3069_s26 + $0xa8] sm:$0xff]  ;;  %v451_v8 = vld [vmem:[%s3069_s26 + $0xb8] sm:$0xff] }
  0x26   : > { %691 = vmatpush1.bf16.msra.mxu0 %v2617_v11  ;;  %2469 = vmatprep.subr.bf16.mxu1 %v2656_v36  ;;  %v468_v9 = vpack.c.bf16 %v446_v6, %v444_v5  ;;  %v471_v10 = vpack.c.bf16 %v451_v8, %v449_v7  ;;  %v448_v11 = vld [vmem:[%s3069_s26 + $0xa0] sm:$0xff]  ;;  %v453_v13 = vld [vmem:[%s3069_s26 + $0xc8] sm:$0xff]  ;;  %v455_v14 = vld [vmem:[%s3069_s26 + $0xd8] sm:$0xff] }
  0x27   : > { %692 = vmatprep.subr.bf16.mxu0 %v2618_v12  ;;  %v450_v12 = vld [vmem:[%s3069_s26 + $0xb0] sm:$0xff]  ;;  %v2658_v26 = vld [vmem:[%s3846_s4 + $0x68] sm:$0xff]   ;;  %v2663_v31 = vld [vmem:[%s3846_s4 + $0x38] sm:$0xff]  }
  0x28   : > { %v470_v15 = vpack.c.bf16 %v450_v12, %v448_v11  ;;  %v458_v24 = vld [vmem:[%s3069_s26 + $0xf0] sm:$0xff]  ;;  %v2659_v27 = vld [vmem:[%s3846_s4 + $0x28] sm:$0xff]   ;;  %v1137_v32 = vld [vmem:[%s3220_s24] sm:$0xff] }
  0x29   : > { %2470 = vmatpush3.bf16.msra.mxu1 %v2657_v38  ;;  %v2660_v28 = vld [vmem:[%s3846_s4 + $0x70] sm:$0xff]   ;;  %1169 = vrot.lane.b32.xlu0 %v1137_v32, %s2916_s25  ;;  %v1138_v34 = vld [vmem:[%s3220_s24 + $0x8] sm:$0xff]  ;;  %v1141_v36 = vld [vmem:[%s3220_s24 + $0x20] sm:$0xff] }
  0x2a   : > { %693 = vmatpush1.bf16.msra.mxu0 %v2620_v16  ;;  %v473_v16 = vpack.c.bf16 %v455_v14, %v453_v13  ;;  %2471 = vmatprep.subr.bf16.mxu1 %v2658_v26  ;;  %v1143_v38 = vld [vmem:[%s3220_s24 + $0x30] sm:$0xff]  ;;  %v1150_v45 = vld [vmem:[%s3220_s24 + $0x68] sm:$0xff]  ;;  %v1152_v47 = vld [vmem:[%s3220_s24 + $0x78] sm:$0xff] }
  0x2b   : > { %694 = vmatprep.subr.bf16.mxu0 %v2621_v17  ;;  %v452_v17 = vld [vmem:[%s3069_s26 + $0xc0] sm:$0xff]  ;;  %v1151_v46 = vld [vmem:[%s3220_s24 + $0x70] sm:$0xff] }
  0x2c   : > { %v508_v51 = vld [vmem:[%s3845_s3] sm:$0x3] }
  0x2d   : > { %2472 = vmatpush3.bf16.msra.mxu1 %v2659_v27  ;;  %1171 = vrot.lane.b32.xlu0 %v1138_v34, %s2916_s25 }
  0x2e   : > { %695 = vmatpush1.bf16.msra.mxu0 %v2623_v18  ;;  %v454_v18 = vld [vmem:[%s3069_s26 + $0xd0] sm:$0xff]  ;;  %2473 = vmatprep.subr.bf16.mxu1 %v2660_v28 }
  0x2f   : > { %696 = vmatprep.subr.bf16.mxu0 %v2624_v19  ;;  %v457_v19 = vld [vmem:[%s3069_s26 + $0xe8] sm:$0xff] }
  0x31   : > { %1177 = vrot.lane.b32.xlu0 %v1141_v36, %s2916_s25 }
  0x32   : > { %697 = vmatpush1.bf16.msra.mxu0 %v2626_v20  ;;  %v459_v20 = vld [vmem:[%s3069_s26 + $0xf8] sm:$0xff] }
  0x33   : > { %698 = vmatprep.subr.bf16.mxu0 %v2627_v21  ;;  %v472_v21 = vpack.c.bf16 %v454_v18, %v452_v17  ;;  %v475_v22 = vpack.c.bf16 %v459_v20, %v457_v19 }
  0x35   : > { %1181 = vrot.lane.b32.xlu0 %v1143_v38, %s2916_s25 }
  0x36   : > { %699 = vmatpush1.bf16.msra.mxu0 %v2629_v23  ;;  %v456_v23 = vld [vmem:[%s3069_s26 + $0xe0] sm:$0xff]  ;;  %s2856_s26 = sshll.u32 %s2918_s16, 4  ;;  %s2857_s26 = int_to_ptr.vmem [resolvable:$false] %s2856_s26 }
  0x37   : > { %700 = vmatprep.subr.bf16.mxu0 %v2630_v25  ;;  %v474_v25 = vpack.c.bf16 %v458_v24, %v456_v23 }
  0x3a   : > { %701 = vmatpush1.bf16.msra.mxu0 %v2632_v29  ;;  %v2661_v29 = vld [vmem:[%s3846_s4 + $0x30] sm:$0xff]  }
  0x3b   : > { %702 = vmatprep.subr.bf16.mxu0 %v2633_v30  ;;  %2474 = vmatpush3.bf16.msra.mxu1 %v2661_v29  ;;  %v2662_v30 = vld [vmem:[%s3846_s4 + $0x78] sm:$0xff]  }
  0x3c   : > { %2475 = vmatprep.subr.bf16.mxu1 %v2662_v30 }
  0x3e   : > { %703 = vmatpush1.bf16.msra.mxu0 %v2635_v33  ;;  %v1139_v33 = vld [vmem:[%s3220_s24 + $0x10] sm:$0xff] }
  0x3f   : > { %704 = vmatprep.subr.bf16.mxu0 %v2636_v35  ;;  %2476 = vmatpush3.bf16.msra.mxu1 %v2663_v31  ;;  %v1140_v35 = vld [vmem:[%s3220_s24 + $0x18] sm:$0xff] }
  0x40   : > { %1173 = vrot.lane.b32.xlu1 %v1139_v33, %s2916_s25 }
  0x42   : > { %705 = vmatpush1.bf16.msra.mxu0 %v2638_v37  ;;  %v1142_v37 = vld [vmem:[%s3220_s24 + $0x28] sm:$0xff] }
  0x43   : > { %706 = vmatprep.subr.bf16.mxu0 %v2639_v39  ;;  %v1144_v39 = vld [vmem:[%s3220_s24 + $0x38] sm:$0xff] }
  0x44   : > { %1175 = vrot.lane.b32.xlu1 %v1140_v35, %s2916_s25 }
  0x46   : > { %707 = vmatpush1.bf16.msra.mxu0 %v2641_v40  ;;  %v1145_v40 = vld [vmem:[%s3220_s24 + $0x40] sm:$0xff] }
  0x47   : > { %708 = vmatprep.subr.bf16.mxu0 %v2642_v41  ;;  %v1146_v41 = vld [vmem:[%s3220_s24 + $0x48] sm:$0xff]  ;;  %1185 = vrot.lane.b32.xlu0 %v1145_v40, %s2916_s25 }
  0x48   : > { %1179 = vrot.lane.b32.xlu1 %v1142_v37, %s2916_s25 }
  0x4a   : > { %709 = vmatpush1.bf16.msra.mxu0 %v2644_v42  ;;  %v1147_v42 = vld [vmem:[%s3220_s24 + $0x50] sm:$0xff] }
  0x4b   : > { %710 = vmatprep.subr.bf16.mxu0 %v2645_v43  ;;  %v1148_v43 = vld [vmem:[%s3220_s24 + $0x58] sm:$0xff]  ;;  %1189 = vrot.lane.b32.xlu0 %v1147_v42, %s2916_s25 }
  0x4c   : > { %1183 = vrot.lane.b32.xlu1 %v1144_v39, %s2916_s25 }
  0x4e   : > { %711 = vmatpush1.bf16.msra.mxu0 %v2647_v44  ;;  %v1149_v44 = vld [vmem:[%s3220_s24 + $0x60] sm:$0xff] }
  0x4f   : > { %1193 = vrot.lane.b32.xlu0 %v1149_v44, %s2916_s25 }
  0x50   : > { %1187 = vrot.lane.b32.xlu1 %v1146_v41, %s2916_s25 }
  0x51   : > { %713 = vmatmul.mubr.bf16.vlgmr.msra.gmra.mrb[0].mxu0 %v460_v49  ;;  %v511_v49 = vshrl.u32 %v510_v48, 7 }
  0x52   : > { %722 = vmatprep.mubr.bf16.mxu0 %v463_v50 }
  0x53   : > { %1197 = vrot.lane.b32.xlu0 %v1151_v46, %s2916_s25  ;;  %v3254_v50 = vsub.s32 0, %v511_v49  ;;  %v3259_v52 = vsub.s32 1, %v511_v49 }
  0x54   : > { %1191 = vrot.lane.b32.xlu1 %v1148_v43, %s2916_s25 }
  0x55   : > { %v3262_v53 = vrot.slane %v508_v51, %v3254_v50  ;;  %v3265_v54 = vrot.slane %v508_v51, %v3259_v52 }
  0x58   : > { %1195 = vrot.lane.b32.xlu1 %v1150_v45, %s2916_s25 }
  0x59   : > { %723 = vmatmul.mubr.bf16.gmra.mrb[4].mxu0 %v462_v55 }
  0x5a   : > { %732 = vmatprep.mubr.bf16.mxu0 %v465_v56 }
  0x5c   : > { %1199 = vrot.lane.b32.xlu1 %v1152_v47, %s2916_s25 }
  0x61   : > { %733 = vmatmul.mubr.bf16.gmra.mrb[8].mxu0 %v464_v61 }
  0x62   : > { %742 = vmatprep.mubr.bf16.mxu0 %v467_v62 }
  0x69   : > { %743 = vmatmul.mubr.bf16.gmra.mrb[12].mxu0 %v466_v3 }
  0x6a   : > { %752 = vmatprep.mubr.bf16.mxu0 %v469_v4 }
  0x71   : > { %753 = vmatmul.mubr.bf16.gmra.mrb[16].mxu0 %v468_v9 }
  0x72   : > { %762 = vmatprep.mubr.bf16.mxu0 %v471_v10 }
  0x79   : > { %763 = vmatmul.mubr.bf16.gmra.mrb[20].mxu0 %v470_v15 }
  0x7a   : > { %772 = vmatprep.mubr.bf16.mxu0 %v473_v16 }
  0x81   : > { %773 = vmatmul.mubr.bf16.gmra.mrb[24].mxu0 %v472_v21 }
  0x82   : > { %782 = vmatprep.mubr.bf16.mxu0 %v475_v22 }
  0x89   : > { %783 = vmatmul.mubr.bf16.gmra.mrb[28].mxu0 %v474_v25 }
 0x124   : > { %v714_v55 = vpop.f32.mrb[0].mxu0 }
 0x125   : > { %v715_v56 = vadd.f32 %v714_v55, %v3262_v53  ;;  %v716_v57 = vpop.f32.mrb[1].mxu0 }
 0x126   : > { %v717_v58 = vadd.f32 %v716_v57, %v3265_v54  ;;  %v718_v59 = vpop.f32.mrb[2].mxu0 }
 0x127   : > { %v825_v60 = vmul.f32 0.01, %v715_v56  ;;  %v719_v61 = vadd.f32 %v718_v59, %v3262_v53  ;;  %v720_v62 = vpop.f32.mrb[3].mxu0  ;;  %vm793_vm0 = vcmp.gt.f32.partialorder %v715_v56, 0.0 }
 0x128   : > { %v826_v63 = vmul.f32 0.01, %v717_v58  ;;  %v721_v0 = vadd.f32 %v720_v62, %v3265_v54  ;;  %vm794_vm2 = vcmp.gt.f32.partialorder %v717_v58, 0.0 }
 0x129   : > { %vm795_vm1 = vcmp.gt.f32.partialorder %v719_v61, 0.0  ;;  %v827_v1 = vmul.f32 0.01, %v719_v61  ;;  %v857_v3 = vsel %vm793_vm0, %v715_v56, %v825_v60 }
 0x12a   : > { %v828_v2 = vmul.f32 0.01, %v721_v0  ;;  %vm796_vm3 = vcmp.gt.f32.partialorder %v721_v0, 0.0  ;;  %v858_v6 = vsel %vm794_vm2, %v717_v58, %v826_v63 }
 0x12b   : > { %v859_v4 = vsel %vm795_vm1, %v719_v61, %v827_v1 }
 0x12c   : > { %v724_v5 = vpop.f32.mrb[4].mxu0  ;;  %v860_v7 = vsel %vm796_vm3, %v721_v0, %v828_v2  ;;  %v889_v8 = vpack.c.bf16 %v859_v4, %v857_v3 }
 0x12d   : > { %v725_v9 = vadd.f32 %v724_v5, %v3262_v53  ;;  %v726_v10 = vpop.f32.mrb[5].mxu0  ;;  %v890_v11 = vpack.c.bf16 %v860_v7, %v858_v6 }
 0x12e   : > { %v727_v12 = vadd.f32 %v726_v10, %v3265_v54  ;;  %v728_v13 = vpop.f32.mrb[6].mxu0 }
 0x12f   : > { %v829_v14 = vmul.f32 0.01, %v725_v9  ;;  %v729_v15 = vadd.f32 %v728_v13, %v3262_v53  ;;  %v730_v16 = vpop.f32.mrb[7].mxu0  ;;  %1072 = vmatprep.mubr.bf16.mxu1 %v890_v11  ;;  %vm797_vm4 = vcmp.gt.f32.partialorder %v725_v9, 0.0 }
 0x130   : > { %v830_v17 = vmul.f32 0.01, %v727_v12  ;;  %v731_v18 = vadd.f32 %v730_v16, %v3265_v54  ;;  %1073 = vmatmul.mubr.bf16.vlgmr.msra.gmra.mrb[0].mxu1 %v889_v8  ;;  %vm798_vm5 = vcmp.gt.f32.partialorder %v727_v12, 0.0 }
 0x131   : > { %vm799_vm6 = vcmp.gt.f32.partialorder %v729_v15, 0.0  ;;  %v831_v19 = vmul.f32 0.01, %v729_v15  ;;  %v861_v21 = vsel %vm797_vm4, %v725_v9, %v829_v14 }
 0x132   : > { %vm800_vm7 = vcmp.gt.f32.partialorder %v731_v18, 0.0  ;;  %v832_v20 = vmul.f32 0.01, %v731_v18  ;;  %v862_v24 = vsel %vm798_vm5, %v727_v12, %v830_v17 }
 0x133   : > { %v863_v22 = vsel %vm799_vm6, %v729_v15, %v831_v19 }
 0x134   : > { %v734_v23 = vpop.f32.mrb[8].mxu0  ;;  %v864_v25 = vsel %vm800_vm7, %v731_v18, %v832_v20  ;;  %v891_v26 = vpack.c.bf16 %v863_v22, %v861_v21 }
 0x135   : > { %v735_v27 = vadd.f32 %v734_v23, %v3262_v53  ;;  %v736_v28 = vpop.f32.mrb[9].mxu0  ;;  %v892_v29 = vpack.c.bf16 %v864_v25, %v862_v24 }
 0x136   : > { %v737_v30 = vadd.f32 %v736_v28, %v3265_v54  ;;  %v738_v31 = vpop.f32.mrb[10].mxu0 }
 0x137   : > { %v833_v32 = vmul.f32 0.01, %v735_v27  ;;  %v739_v33 = vadd.f32 %v738_v31, %v3262_v53  ;;  %v740_v34 = vpop.f32.mrb[11].mxu0  ;;  %1080 = vmatprep.mubr.bf16.mxu1 %v892_v29  ;;  %vm801_vm8 = vcmp.gt.f32.partialorder %v735_v27, 0.0 }
 0x138   : > { %v834_v35 = vmul.f32 0.01, %v737_v30  ;;  %v741_v36 = vadd.f32 %v740_v34, %v3265_v54  ;;  %1081 = vmatmul.mubr.bf16.gmra.mrb[4].mxu1 %v891_v26  ;;  %vm802_vm9 = vcmp.gt.f32.partialorder %v737_v30, 0.0 }
 0x139   : > { %vm803_vm10 = vcmp.gt.f32.partialorder %v739_v33, 0.0  ;;  %v835_v37 = vmul.f32 0.01, %v739_v33  ;;  %v865_v39 = vsel %vm801_vm8, %v735_v27, %v833_v32 }
 0x13a   : > { %vm804_vm11 = vcmp.gt.f32.partialorder %v741_v36, 0.0  ;;  %v836_v38 = vmul.f32 0.01, %v741_v36  ;;  %v866_v42 = vsel %vm802_vm9, %v737_v30, %v834_v35 }
 0x13b   : > { %v867_v40 = vsel %vm803_vm10, %v739_v33, %v835_v37 }
 0x13c   : > { %v744_v41 = vpop.f32.mrb[12].mxu0  ;;  %v868_v43 = vsel %vm804_vm11, %v741_v36, %v836_v38  ;;  %v893_v44 = vpack.c.bf16 %v867_v40, %v865_v39 }
 0x13d   : > { %v745_v45 = vadd.f32 %v744_v41, %v3262_v53  ;;  %v746_v46 = vpop.f32.mrb[13].mxu0  ;;  %v894_v47 = vpack.c.bf16 %v868_v43, %v866_v42 }
 0x13e   : > { %v747_v48 = vadd.f32 %v746_v46, %v3265_v54  ;;  %v748_v49 = vpop.f32.mrb[14].mxu0 }
 0x13f   : > { %v837_v51 = vmul.f32 0.01, %v745_v45  ;;  %v749_v55 = vadd.f32 %v748_v49, %v3262_v53  ;;  %v750_v56 = vpop.f32.mrb[15].mxu0  ;;  %1088 = vmatprep.mubr.bf16.mxu1 %v894_v47  ;;  %vm805_vm12 = vcmp.gt.f32.partialorder %v745_v45, 0.0 }
 0x140   : > { %v838_v57 = vmul.f32 0.01, %v747_v48  ;;  %v751_v58 = vadd.f32 %v750_v56, %v3265_v54  ;;  %1089 = vmatmul.mubr.bf16.gmra.mrb[8].mxu1 %v893_v44  ;;  %vm806_vm13 = vcmp.gt.f32.partialorder %v747_v48, 0.0 }
 0x141   : > { %vm807_vm14 = vcmp.gt.f32.partialorder %v749_v55, 0.0  ;;  %v839_v59 = vmul.f32 0.01, %v749_v55  ;;  %v869_v61 = vsel %vm805_vm12, %v745_v45, %v837_v51 }
 0x142   : > { %vm808_vm15 = vcmp.gt.f32.partialorder %v751_v58, 0.0  ;;  %v840_v60 = vmul.f32 0.01, %v751_v58  ;;  %v870_v0 = vsel %vm806_vm13, %v747_v48, %v838_v57 }
 0x143   : > { %v871_v62 = vsel %vm807_vm14, %v749_v55, %v839_v59 }
 0x144   : > { %v754_v63 = vpop.f32.mrb[16].mxu0  ;;  %v872_v1 = vsel %vm808_vm15, %v751_v58, %v840_v60  ;;  %v895_v2 = vpack.c.bf16 %v871_v62, %v869_v61 }
 0x145   : > { %v755_v3 = vadd.f32 %v754_v63, %v3262_v53  ;;  %v756_v4 = vpop.f32.mrb[17].mxu0  ;;  %v896_v5 = vpack.c.bf16 %v872_v1, %v870_v0 }
 0x146   : > { %v757_v6 = vadd.f32 %v756_v4, %v3265_v54  ;;  %v758_v7 = vpop.f32.mrb[18].mxu0 }
 0x147   : > { %v841_v8 = vmul.f32 0.01, %v755_v3  ;;  %v759_v9 = vadd.f32 %v758_v7, %v3262_v53  ;;  %v760_v10 = vpop.f32.mrb[19].mxu0  ;;  %1096 = vmatprep.mubr.bf16.mxu1 %v896_v5  ;;  %vm809_vm0 = vcmp.gt.f32.partialorder %v755_v3, 0.0 }
 0x148   : > { %v842_v11 = vmul.f32 0.01, %v757_v6  ;;  %v761_v12 = vadd.f32 %v760_v10, %v3265_v54  ;;  %1097 = vmatmul.mubr.bf16.gmra.mrb[12].mxu1 %v895_v2  ;;  %vm810_vm1 = vcmp.gt.f32.partialorder %v757_v6, 0.0 }
 0x149   : > { %vm811_vm2 = vcmp.gt.f32.partialorder %v759_v9, 0.0  ;;  %v843_v13 = vmul.f32 0.01, %v759_v9  ;;  %v873_v15 = vsel %vm809_vm0, %v755_v3, %v841_v8  ;;  %vm1381_vm0 = vcmask 523264  }
 0x14a   : > { %vm812_vm3 = vcmp.gt.f32.partialorder %v761_v12, 0.0  ;;  %v844_v14 = vmul.f32 0.01, %v761_v12  ;;  %v874_v18 = vsel %vm810_vm1, %v757_v6, %v842_v11 }
 0x14b   : > { %v875_v16 = vsel %vm811_vm2, %v759_v9, %v843_v13 }
 0x14c   : > { %v764_v17 = vpop.f32.mrb[20].mxu0  ;;  %v876_v19 = vsel %vm812_vm3, %v761_v12, %v844_v14  ;;  %v897_v20 = vpack.c.bf16 %v875_v16, %v873_v15  ;;  %v2669_v15 = vld [vmem:[%s3848_s6 + $0x14] ss:$8 sps:$4 sm:$0xff]   ;;  %v2667_v16 = vld [vmem:[%s3848_s6 + $0x10] ss:$8 sps:$4 sm:$0xff]  }
 0x14d   : > { %v765_v21 = vadd.f32 %v764_v17, %v3262_v53  ;;  %v766_v22 = vpop.f32.mrb[21].mxu0  ;;  %v898_v23 = vpack.c.bf16 %v876_v19, %v874_v18  ;;  %v2672_v17 = vld [vmem:[%s3848_s6 + $0x24] ss:$8 sps:$4 sm:$0xff]   ;;  %v2670_v18 = vld [vmem:[%s3848_s6 + $0x20] ss:$8 sps:$4 sm:$0xff]  }
 0x14e   : > { %v767_v24 = vadd.f32 %v766_v22, %v3265_v54  ;;  %v768_v25 = vpop.f32.mrb[22].mxu0  ;;  %v2675_v19 = vld [vmem:[%s3848_s6 + $0x34] ss:$8 sps:$4 sm:$0xff]  }
 0x14f   : > { %v845_v26 = vmul.f32 0.01, %v765_v21  ;;  %v769_v27 = vadd.f32 %v768_v25, %v3262_v53  ;;  %v770_v28 = vpop.f32.mrb[23].mxu0  ;;  %1104 = vmatprep.mubr.bf16.mxu1 %v898_v23  ;;  %vm813_vm4 = vcmp.gt.f32.partialorder %v765_v21, 0.0  ;;  %v2917_v23 = vmov 0  }
 0x150   : > { %v846_v29 = vmul.f32 0.01, %v767_v24  ;;  %v771_v30 = vadd.f32 %v770_v28, %v3265_v54  ;;  %1105 = vmatmul.mubr.bf16.gmra.mrb[16].mxu1 %v897_v20  ;;  %vm814_vm5 = vcmp.gt.f32.partialorder %v767_v24, 0.0  ;;  %v2673_v20 = vld [vmem:[%s3848_s6 + $0x30] ss:$8 sps:$4 sm:$0xff]  }
 0x151   : > { %vm815_vm6 = vcmp.gt.f32.partialorder %v769_v27, 0.0  ;;  %v847_v31 = vmul.f32 0.01, %v769_v27  ;;  %v877_v33 = vsel %vm813_vm4, %v765_v21, %v845_v26  ;;  %v1170_v21 = vpop.permute.xlu0 %1169 }
 0x152   : > { %vm816_vm7 = vcmp.gt.f32.partialorder %v771_v30, 0.0  ;;  %v848_v32 = vmul.f32 0.01, %v771_v30  ;;  %v878_v36 = vsel %vm814_vm5, %v767_v24, %v846_v29  ;;  %v3327_v24 = vld [vmem:[%s3847_s5] ss:$0 sm:$0xff] }
 0x153   : > { %v879_v34 = vsel %vm815_vm6, %v769_v27, %v847_v31 }
 0x154   : > { %v774_v35 = vpop.f32.mrb[24].mxu0  ;;  %v880_v37 = vsel %vm816_vm7, %v771_v30, %v848_v32  ;;  %v899_v38 = vpack.c.bf16 %v879_v34, %v877_v33  ;;  %v1174_v34 = vpop.permute.xlu1 %1173 }
 0x155   : > { %v775_v39 = vadd.f32 %v774_v35, %v3262_v53  ;;  %v776_v40 = vpop.f32.mrb[25].mxu0  ;;  %v900_v41 = vpack.c.bf16 %v880_v37, %v878_v36  ;;  %v1172_v31 = vpop.permute.xlu0 %1171 }
 0x156   : > { %v777_v42 = vadd.f32 %v776_v40, %v3265_v54  ;;  %v778_v43 = vpop.f32.mrb[26].mxu0 }
 0x157   : > { %v849_v44 = vmul.f32 0.01, %v775_v39  ;;  %v779_v45 = vadd.f32 %v778_v43, %v3262_v53  ;;  %v780_v46 = vpop.f32.mrb[27].mxu0  ;;  %1112 = vmatprep.mubr.bf16.mxu1 %v900_v41  ;;  %vm817_vm8 = vcmp.gt.f32.partialorder %v775_v39, 0.0 }
 0x158   : > { %v850_v47 = vmul.f32 0.01, %v777_v42  ;;  %v781_v48 = vadd.f32 %v780_v46, %v3265_v54  ;;  %1113 = vmatmul.mubr.bf16.gmra.mrb[20].mxu1 %v899_v38  ;;  %vm818_vm9 = vcmp.gt.f32.partialorder %v777_v42, 0.0  ;;  %v1176_v43 = vpop.permute.xlu1 %1175 }
 0x159   : > { %vm819_vm10 = vcmp.gt.f32.partialorder %v779_v45, 0.0  ;;  %v851_v49 = vmul.f32 0.01, %v779_v45  ;;  %v881_v55 = vsel %vm817_vm8, %v775_v39, %v849_v44 }
 0x15a   : > { %vm820_vm11 = vcmp.gt.f32.partialorder %v781_v48, 0.0  ;;  %v852_v51 = vmul.f32 0.01, %v781_v48  ;;  %v882_v58 = vsel %vm818_vm9, %v777_v42, %v850_v47 }
 0x15b   : > { %v883_v56 = vsel %vm819_vm10, %v779_v45, %v851_v49 }
 0x15c   : > { %v784_v57 = vpop.f32.mrb[28].mxu0  ;;  %v884_v59 = vsel %vm820_vm11, %v781_v48, %v852_v51  ;;  %v901_v60 = vpack.c.bf16 %v883_v56, %v881_v55  ;;  %v1178_v56 = vpop.permute.xlu0 %1177 }
 0x15d   : > { %v785_v61 = vadd.f32 %v784_v57, %v3262_v53  ;;  %v786_v62 = vpop.f32.mrb[29].mxu0  ;;  %v902_v63 = vpack.c.bf16 %v884_v59, %v882_v58  ;;  %v1180_v59 = vpop.permute.xlu1 %1179 }
 0x15e   : > { %v787_v0 = vadd.f32 %v786_v62, %v3265_v54  ;;  %v788_v1 = vpop.f32.mrb[30].mxu0 }
 0x15f   : > { %v853_v2 = vmul.f32 0.01, %v785_v61  ;;  %v789_v3 = vadd.f32 %v788_v1, %v3262_v53  ;;  %v790_v4 = vpop.f32.mrb[31].mxu0  ;;  %1120 = vmatprep.mubr.bf16.mxu1 %v902_v63  ;;  %vm821_vm12 = vcmp.gt.f32.partialorder %v785_v61, 0.0  ;;  %v2664_v53 = vld [vmem:[%s3848_s6] ss:$8 sps:$4 sm:$0xff]  }
 0x160   : > { %v854_v5 = vmul.f32 0.01, %v787_v0  ;;  %v791_v6 = vadd.f32 %v790_v4, %v3265_v54  ;;  %1121 = vmatmul.mubr.bf16.gmra.mrb[24].mxu1 %v901_v60  ;;  %vm822_vm13 = vcmp.gt.f32.partialorder %v787_v0, 0.0  ;;  %v2666_v54 = vld [vmem:[%s3848_s6 + $0x4] ss:$8 sps:$4 sm:$0xff]   ;;  %v1182_v4 = vpop.permute.xlu0 %1181 }
 0x161   : > { %vm823_vm14 = vcmp.gt.f32.partialorder %v789_v3, 0.0  ;;  %v855_v7 = vmul.f32 0.01, %v789_v3  ;;  %v885_v9 = vsel %vm821_vm12, %v785_v61, %v853_v2  ;;  %1406 = vmatprep.subr.bf16.mxu1 %v2666_v54 }
 0x162   : > { %vm824_vm15 = vcmp.gt.f32.partialorder %v791_v6, 0.0  ;;  %v856_v8 = vmul.f32 0.01, %v791_v6  ;;  %v886_v11 = vsel %vm822_vm13, %v787_v0, %v854_v5  ;;  %1407 = vmatpush1.bf16.msra.mxu1 %v2664_v53 }
 0x163   : > { %v887_v10 = vsel %vm823_vm14, %v789_v3, %v855_v7  ;;  %1408 = vmatprep.subr.bf16.mxu1 %v2669_v15  ;;  %v1184_v7 = vpop.permute.xlu1 %1183 }
 0x164   : > { %v888_v12 = vsel %vm824_vm15, %v791_v6, %v856_v8  ;;  %v903_v13 = vpack.c.bf16 %v887_v10, %v885_v9  ;;  %v1186_v54 = vpop.permute.xlu0 %1185 }
 0x165   : > { %v904_v14 = vpack.c.bf16 %v888_v12, %v886_v11 }
 0x166   : > { %1409 = vmatpush1.bf16.msra.mxu1 %v2667_v16 }
 0x167   : > { %1128 = vmatprep.mubr.bf16.mxu1 %v904_v14  ;;  %1410 = vmatprep.subr.bf16.mxu1 %v2672_v17  ;;  %v1188_v17 = vpop.permute.xlu1 %1187 }
 0x168   : > { %1129 = vmatmul.mubr.bf16.gmra.mrb[28].mxu1 %v903_v13 }
 0x169   : > { %1438 = vmatprep.mubr.bf16.mxu1 %v2917_v23 }
 0x16a   : > { %1411 = vmatpush1.bf16.msra.mxu1 %v2670_v18 }
 0x16b   : > { %1412 = vmatprep.subr.bf16.mxu1 %v2675_v19 }
 0x16e   : > { %1413 = vmatpush1.bf16.msra.mxu1 %v2673_v20 }
 0x203   : > { %v2477_v22 = vpop.f32.mrb[0].mxu1 }
 0x204   : > { %v2478_v25 = vpop.f32.mrb[1].mxu1 }
 0x205   : > { %v2479_v26 = vadd.f32 %v2478_v25, %v2477_v22  ;;  %v2480_v27 = vpop.f32.mrb[2].mxu1 }
 0x206   : > { %v2481_v28 = vpop.f32.mrb[3].mxu1 }
 0x207   : > { %v3337_v29 = vadd.f32 %v2479_v26, %v3327_v24  ;;  %v2482_v30 = vadd.f32 %v2481_v28, %v2480_v27  ;;  %v1190_v28 = vpop.permute.xlu0 %1189 }
 0x209   : > { %2172 = vst [vmem:[%s3334_s13] sm:$0xff] %v3337_v29  ;;  %v1217_v32 = vmul.f32 %v1170_v21, %v3337_v29  ;;  %v3343_v33 = vadd.f32 %v2482_v30, %v3327_v24 }
 0x20b   : > { %2173 = vst [vmem:[%s3334_s13 + $0x8] sm:$0xff] %v3343_v33  ;;  %v1218_v35 = vmul.f32 %v1172_v31, %v3343_v33  ;;  %v2483_v36 = vpop.f32.mrb[4].mxu1  ;;  %1249 = vrot.lane.b32.xlu0 %v1217_v32, %s2916_s25  ;;  %v1192_v32 = vpop.permute.xlu1 %1191 }
 0x20c   : > { %v2484_v37 = vpop.f32.mrb[5].mxu1 }
 0x20d   : > { %v2485_v38 = vadd.f32 %v2484_v37, %v2483_v36  ;;  %v2486_v39 = vpop.f32.mrb[6].mxu1  ;;  %1251 = vrot.lane.b32.xlu1 %v1218_v35, %s2916_s25 }
 0x20e   : > { %v2487_v40 = vpop.f32.mrb[7].mxu1 }
 0x20f   : > { %v3351_v41 = vadd.f32 %v2485_v38, %v3327_v24  ;;  %v2488_v42 = vadd.f32 %v2487_v40, %v2486_v39 }
 0x211   : > { %2174 = vst [vmem:[%s3334_s13 + $0x10] sm:$0xff] %v3351_v41  ;;  %v1219_v44 = vmul.f32 %v1174_v34, %v3351_v41  ;;  %v3357_v45 = vadd.f32 %v2488_v42, %v3327_v24 }
 0x213   : > { %2175 = vst [vmem:[%s3334_s13 + $0x18] sm:$0xff] %v3357_v45  ;;  %v1220_v46 = vmul.f32 %v1176_v43, %v3357_v45  ;;  %v2489_v47 = vpop.f32.mrb[8].mxu1  ;;  %1253 = vrot.lane.b32.xlu0 %v1219_v44, %s2916_s25  ;;  %v1194_v43 = vpop.permute.xlu0 %1193 }
 0x214   : > { %v2490_v48 = vpop.f32.mrb[9].mxu1 }
 0x215   : > { %v2491_v49 = vadd.f32 %v2490_v48, %v2489_v47  ;;  %v2492_v51 = vpop.f32.mrb[10].mxu1  ;;  %1255 = vrot.lane.b32.xlu1 %v1220_v46, %s2916_s25  ;;  %v1196_v47 = vpop.permute.xlu1 %1195 }
 0x216   : > { %v2493_v55 = vpop.f32.mrb[11].mxu1 }
 0x217   : > { %v3365_v57 = vadd.f32 %v2491_v49, %v3327_v24  ;;  %v2494_v58 = vadd.f32 %v2493_v55, %v2492_v51 }
 0x219   : > { %2176 = vst [vmem:[%s3334_s13 + $0x20] sm:$0xff] %v3365_v57  ;;  %v3370_v60 = vadd.f32 %v2494_v58, %v3327_v24  ;;  %v1221_v61 = vmul.f32 %v1178_v56, %v3365_v57  ;;  %v3436_v58 = vld [vmem:[%s3850_s8] ss:$8 sps:$4 sm:$0xff]  }
 0x21b   : > { %2177 = vst [vmem:[%s3334_s13 + $0x28] sm:$0xff] %v3370_v60  ;;  %v1222_v62 = vmul.f32 %v1180_v59, %v3370_v60  ;;  %v2495_v63 = vpop.f32.mrb[12].mxu1  ;;  %1257 = vrot.lane.b32.xlu0 %v1221_v61, %s2916_s25  ;;  %v2678_v59 = vld [vmem:[%s3850_s8 + $0x4] ss:$8 sps:$4 sm:$0xff]  }
 0x21c   : > { %v2496_v0 = vpop.f32.mrb[13].mxu1  ;;  %1835 = vmatprep.subr.bf16.mxu0 %v2678_v59  ;;  %2525 = vmatprep.subr.bf16.mxu1 %v2678_v59 }
 0x21d   : > { %v2497_v1 = vadd.f32 %v2496_v0, %v2495_v63  ;;  %v2498_v2 = vpop.f32.mrb[14].mxu1  ;;  %1259 = vrot.lane.b32.xlu1 %v1222_v62, %s2916_s25  ;;  %v3445_v63 = vld [vmem:[%s3850_s8 + $0x14] ss:$8 sps:$4 sm:$0xff]   ;;  %1836 = vmatpush1.bf16.msra.mxu0 %v3436_v58 }
 0x21e   : > { %v2499_v3 = vpop.f32.mrb[15].mxu1  ;;  %1837 = vmatprep.subr.bf16.mxu0 %v3445_v63 }
 0x21f   : > { %v3379_v5 = vadd.f32 %v2497_v1, %v3327_v24  ;;  %v2500_v6 = vadd.f32 %v2499_v3, %v2498_v2  ;;  %v1198_v1 = vpop.permute.xlu0 %1197 }
 0x221   : > { %2178 = vst [vmem:[%s3334_s13 + $0x30] sm:$0xff] %v3379_v5  ;;  %v3384_v8 = vadd.f32 %v2500_v6, %v3327_v24  ;;  %v1223_v9 = vmul.f32 %v1182_v4, %v3379_v5  ;;  %v3454_v4 = vld [vmem:[%s3850_s8 + $0x10] ss:$8 sps:$4 sm:$0xff]   ;;  %v1200_v6 = vpop.permute.xlu1 %1199 }
 0x222   : > { %1838 = vmatpush1.bf16.msra.mxu0 %v3454_v4 }
 0x223   : > { %2179 = vst [vmem:[%s3334_s13 + $0x38] sm:$0xff] %v3384_v8  ;;  %v1224_v10 = vmul.f32 %v1184_v7, %v3384_v8  ;;  %v2501_v11 = vpop.f32.mrb[16].mxu1  ;;  %1261 = vrot.lane.b32.xlu0 %v1223_v9, %s2916_s25  ;;  %v3460_v7 = vld [vmem:[%s3850_s8 + $0x24] ss:$8 sps:$4 sm:$0xff]  }
 0x224   : > { %v2502_v12 = vpop.f32.mrb[17].mxu1  ;;  %1839 = vmatprep.subr.bf16.mxu0 %v3460_v7 }
 0x225   : > { %v2503_v13 = vadd.f32 %v2502_v12, %v2501_v11  ;;  %v2504_v14 = vpop.f32.mrb[18].mxu1  ;;  %1263 = vrot.lane.b32.xlu1 %v1224_v10, %s2916_s25  ;;  %v3476_v12 = vld [vmem:[%s3850_s8 + $0x20] ss:$8 sps:$4 sm:$0xff]  }
 0x226   : > { %v2505_v53 = vpop.f32.mrb[19].mxu1  ;;  %1840 = vmatpush1.bf16.msra.mxu0 %v3476_v12 }
 0x227   : > { %v3393_v15 = vadd.f32 %v2503_v13, %v3327_v24  ;;  %v2506_v16 = vadd.f32 %v2505_v53, %v2504_v14  ;;  %v3487_v13 = vld [vmem:[%s3850_s8 + $0x30] ss:$8 sps:$4 sm:$0xff]   ;;  %v3492_v14 = vld [vmem:[%s3850_s8 + $0x44] ss:$8 sps:$4 sm:$0xff]   ;;  %v3498_v53 = vld [vmem:[%s3850_s8 + $0x40] ss:$8 sps:$4 sm:$0xff]  }
 0x229   : > { %2180 = vst [vmem:[%s3334_s13 + $0x40] sm:$0xff] %v3393_v15  ;;  %v3398_v18 = vadd.f32 %v2506_v16, %v3327_v24  ;;  %v1225_v19 = vmul.f32 %v1186_v54, %v3393_v15  ;;  %v3504_v54 = vld [vmem:[%s3850_s8 + $0x54] ss:$8 sps:$4 sm:$0xff]   ;;  %v3510_v16 = vld [vmem:[%s3850_s8 + $0x50] ss:$8 sps:$4 sm:$0xff]  }
 0x22b   : > { %2181 = vst [vmem:[%s3334_s13 + $0x48] sm:$0xff] %v3398_v18  ;;  %v1226_v20 = vmul.f32 %v1188_v17, %v3398_v18  ;;  %v2507_v21 = vpop.f32.mrb[20].mxu1  ;;  %1265 = vrot.lane.b32.xlu0 %v1225_v19, %s2916_s25  ;;  %v3516_v17 = vld [vmem:[%s3850_s8 + $0x64] ss:$8 sps:$4 sm:$0xff]   ;;  %v3522_v19 = vld [vmem:[%s3850_s8 + $0x60] ss:$8 sps:$4 sm:$0xff]  }
 0x22c   : > { %v2508_v22 = vpop.f32.mrb[21].mxu1 }
 0x22d   : > { %v2509_v25 = vadd.f32 %v2508_v22, %v2507_v21  ;;  %v2510_v26 = vpop.f32.mrb[22].mxu1  ;;  %1267 = vrot.lane.b32.xlu1 %v1226_v20, %s2916_s25  ;;  %v3528_v20 = vld [vmem:[%s3850_s8 + $0x74] ss:$8 sps:$4 sm:$0xff]   ;;  %v3534_v21 = vld [vmem:[%s3850_s8 + $0x70] ss:$8 sps:$4 sm:$0xff]  }
 0x22e   : > { %v2511_v27 = vpop.f32.mrb[23].mxu1  ;;  %v3540_v22 = vld [vmem:[%s3850_s8 + $0x84] ss:$8 sps:$4 sm:$0xff]  }
 0x22f   : > { %v3407_v30 = vadd.f32 %v2509_v25, %v3327_v24  ;;  %v2512_v31 = vadd.f32 %v2511_v27, %v2510_v26  ;;  %v3546_v25 = vld [vmem:[%s3850_s8 + $0x80] ss:$8 sps:$4 sm:$0xff]   ;;  %v3552_v26 = vld [vmem:[%s3850_s8 + $0x94] ss:$8 sps:$4 sm:$0xff]   ;;  %v3558_v27 = vld [vmem:[%s3850_s8 + $0x90] ss:$8 sps:$4 sm:$0xff]  }
 0x231   : > { %2182 = vst [vmem:[%s3334_s13 + $0x50] sm:$0xff] %v3407_v30  ;;  %v3412_v34 = vadd.f32 %v2512_v31, %v3327_v24  ;;  %v1227_v35 = vmul.f32 %v1190_v28, %v3407_v30  ;;  %v3564_v28 = vld [vmem:[%s3850_s8 + $0xa4] ss:$8 sps:$4 sm:$0xff]   ;;  %v3570_v31 = vld [vmem:[%s3850_s8 + $0xa0] ss:$8 sps:$4 sm:$0xff]  }
 0x233   : > { %2183 = vst [vmem:[%s3334_s13 + $0x58] sm:$0xff] %v3412_v34  ;;  %v1228_v36 = vmul.f32 %v1192_v32, %v3412_v34  ;;  %v2513_v37 = vpop.f32.mrb[24].mxu1  ;;  %1269 = vrot.lane.b32.xlu0 %v1227_v35, %s2916_s25  ;;  %v3576_v32 = vld [vmem:[%s3850_s8 + $0xb4] ss:$8 sps:$4 sm:$0xff]   ;;  %v3582_v35 = vld [vmem:[%s3850_s8 + $0xb0] ss:$8 sps:$4 sm:$0xff]  }
 0x234   : > { %v2514_v38 = vpop.f32.mrb[25].mxu1 }
 0x235   : > { %v2515_v39 = vadd.f32 %v2514_v38, %v2513_v37  ;;  %v2516_v40 = vpop.f32.mrb[26].mxu1  ;;  %1271 = vrot.lane.b32.xlu1 %v1228_v36, %s2916_s25  ;;  %v3588_v36 = vld [vmem:[%s3850_s8 + $0xc4] ss:$8 sps:$4 sm:$0xff]   ;;  %v3594_v37 = vld [vmem:[%s3850_s8 + $0xc0] ss:$8 sps:$4 sm:$0xff]  }
 0x236   : > { %v2517_v42 = vpop.f32.mrb[27].mxu1 }
 0x237   : > { %v3421_v44 = vadd.f32 %v2515_v39, %v3327_v24  ;;  %v2518_v46 = vadd.f32 %v2517_v42, %v2516_v40 }
 0x239   : > { %2184 = vst [vmem:[%s3334_s13 + $0x60] sm:$0xff] %v3421_v44  ;;  %v3426_v48 = vadd.f32 %v2518_v46, %v3327_v24  ;;  %v1229_v49 = vmul.f32 %v1194_v43, %v3421_v44 }
 0x23b   : > { %2185 = vst [vmem:[%s3334_s13 + $0x68] sm:$0xff] %v3426_v48  ;;  %v1230_v51 = vmul.f32 %v1196_v47, %v3426_v48  ;;  %v2519_v55 = vpop.f32.mrb[28].mxu1  ;;  %1273 = vrot.lane.b32.xlu0 %v1229_v49, %s2916_s25 }
 0x23c   : > { %v2520_v56 = vpop.f32.mrb[29].mxu1 }
 0x23d   : > { %v2521_v61 = vadd.f32 %v2520_v56, %v2519_v55  ;;  %v2522_v62 = vpop.f32.mrb[30].mxu1  ;;  %1275 = vrot.lane.b32.xlu1 %v1230_v51, %s2916_s25 }
 0x23e   : > { %v2523_v0 = vpop.f32.mrb[31].mxu1 }
 0x23f   : > { %v3448_v2 = vadd.f32 %v2521_v61, %v3327_v24  ;;  %v2524_v3 = vadd.f32 %v2523_v0, %v2522_v62 }
 0x241   : > { %2186 = vst [vmem:[%s3334_s13 + $0x70] sm:$0xff] %v3448_v2  ;;  %v3465_v9 = vadd.f32 %v2524_v3, %v3327_v24  ;;  %v1231_v10 = vmul.f32 %v1198_v1, %v3448_v2  ;;  %v2687_v24 = vld [vmem:[%s3850_s8 + $0x34] ss:$8 sps:$4 sm:$0xff]  }
 0x242   : > { %1841 = vmatprep.subr.bf16.mxu0 %v2687_v24 }
 0x243   : > { %2187 = vst [vmem:[%s3334_s13 + $0x78] sm:$0xff] %v3465_v9  ;;  %v1232_v11 = vmul.f32 %v1200_v6, %v3465_v9  ;;  %1277 = vrot.lane.b32.xlu0 %v1231_v10, %s2916_s25  ;;  %1842 = vmatpush1.bf16.msra.mxu0 %v3487_v13  ;;  %s2858_s13 = scalar_lea.vmem %s2857_s26, 8192 }
 0x244   : > { %1843 = vmatprep.subr.bf16.mxu0 %v3492_v14 }
 0x245   : > { %1279 = vrot.lane.b32.xlu1 %v1232_v11, %s2916_s25  ;;  %s2208_s25 = sshll.u32 %s3740_s22, 4  ;;  %s3794_s25 = int_to_ptr.vmem [resolvable:$true] %s2208_s25 }
 0x246   : > { %s2852_s29 = scalar_lea.vmem %s3794_s25, 4096  ;;  %p2859_p0 = scmp.lt.s32.totalorder %s3794_s25, %s2857_s26 }
 0x247   : > { %1844 = vmatpush1.bf16.msra.mxu0 %v3498_v53  ;;  %p2853_p11 = scmp.ne.s32.totalorder %s3794_s25, %s2852_s29  ;;  %p2860_p1 = scmp.lt.s32.totalorder %s2858_s13, %s2852_s29 }
 0x248   : > { %1845 = vmatprep.subr.bf16.mxu0 %v3504_v54 }
 0x249   : > { %p2854_p12 = pnand %p2853_p11, %p3019_p5  ;;  %p2861_p2 = por %p2860_p1, %p2859_p0 }
 0x24b   : > { %1846 = vmatpush1.bf16.msra.mxu0 %v3510_v16  ;;  %p2855_p13 = pneg %p2854_p12 }
 0x24c   : > { %1847 = vmatprep.subr.bf16.mxu0 %v3516_v17 }
 0x24d   : > { %p2862_p3 = pnand %p2861_p2, %p2855_p13 }
 0x24f   : > { %1848 = vmatpush1.bf16.msra.mxu0 %v3522_v19 }
 0x250   : > { %1849 = vmatprep.subr.bf16.mxu0 %v3528_v20 }
 0x253   : > { %1850 = vmatpush1.bf16.msra.mxu0 %v3534_v21 }
 0x254   : > { %1851 = vmatprep.subr.bf16.mxu0 %v3540_v22 }
 0x257   : > { %1852 = vmatpush1.bf16.msra.mxu0 %v3546_v25 }
 0x258   : > { %1853 = vmatprep.subr.bf16.mxu0 %v3552_v26 }
 0x25b   : > { %1854 = vmatpush1.bf16.msra.mxu0 %v3558_v27 }
 0x25c   : > { %1855 = vmatprep.subr.bf16.mxu0 %v3564_v28 }
 0x25f   : > { %1856 = vmatpush1.bf16.msra.mxu0 %v3570_v31 }
 0x260   : > { %1857 = vmatprep.subr.bf16.mxu0 %v3576_v32 }
 0x263   : > { %1858 = vmatpush1.bf16.msra.mxu0 %v3582_v35 }
 0x264   : > { %1859 = vmatprep.subr.bf16.mxu0 %v3588_v36 }
 0x267   : > { %1860 = vmatpush1.bf16.msra.mxu0 %v3594_v37 }
 0x27d   : > { %v1250_v38 = vpop.permute.xlu0 %1249 }
 0x27e   : > { %v1297_v40 = vadd.f32 %v1250_v38, %v3337_v29 }
 0x27f   : > { %v1252_v39 = vpop.permute.xlu1 %1251 }
 0x280   : > { %v1298_v42 = vadd.f32 %v1252_v39, %v3343_v33 }
 0x282   : > { %v1313_v43 = vpack.c.bf16 %v1298_v42, %v1297_v40 }
 0x284   : > { %2380 = vmatmul.mubr.msk.bf16.vlgmr.msra.gmra.mrb[32].mxu1 %vm1381_vm0, %v1313_v43 }
 0x285   : > { %v1254_v46 = vpop.permute.xlu0 %1253  ;;  %1448 = vmatprep.mubr.bf16.mxu1 %v2917_v23  ;;  %2541 = vmatpush1.bf16.msra.mxu1 %v3436_v58 }
 0x286   : > { %2526 = vmatprep.subr.bf16.mxu1 %v3445_v63  ;;  %v1299_v49 = vadd.f32 %v1254_v46, %v3351_v41 }
 0x287   : > { %v1256_v47 = vpop.permute.xlu1 %1255 }
 0x288   : > { %v1300_v51 = vadd.f32 %v1256_v47, %v3357_v45 }
 0x289   : > { %2542 = vmatpush1.bf16.msra.mxu1 %v3454_v4 }
 0x28a   : > { %v1314_v29 = vpack.c.bf16 %v1300_v51, %v1299_v49  ;;  %2527 = vmatprep.subr.bf16.mxu1 %v3460_v7 }
 0x28c   : > { %2381 = vmatmul.mubr.msk.bf16.gmra.mrb[36].mxu1 %vm1381_vm0, %v1314_v29 }
 0x28d   : > { %v1258_v33 = vpop.permute.xlu0 %1257  ;;  %1458 = vmatprep.mubr.bf16.mxu1 %v2917_v23  ;;  %2543 = vmatpush1.bf16.msra.mxu1 %v3476_v12 }
 0x28e   : > { %2528 = vmatprep.subr.bf16.mxu1 %v2687_v24  ;;  %v1301_v56 = vadd.f32 %v1258_v33, %v3365_v57 }
 0x28f   : > { %v1260_v55 = vpop.permute.xlu1 %1259 }
 0x290   : > { %v1302_v41 = vadd.f32 %v1260_v55, %v3370_v60 }
 0x291   : > { %2544 = vmatpush1.bf16.msra.mxu1 %v3487_v13 }
 0x292   : > { %v1315_v45 = vpack.c.bf16 %v1302_v41, %v1301_v56  ;;  %2529 = vmatprep.subr.bf16.mxu1 %v3492_v14  ;;  %v2715_v14 = vld [vmem:[%s3850_s8 + $0xd0] ss:$8 sps:$4 sm:$0xff]  }
 0x294   : > { %2382 = vmatmul.mubr.msk.bf16.gmra.mrb[40].mxu1 %vm1381_vm0, %v1315_v45 }
 0x295   : > { %v1262_v58 = vpop.permute.xlu0 %1261  ;;  %1468 = vmatprep.mubr.bf16.mxu1 %v2917_v23  ;;  %2545 = vmatpush1.bf16.msra.mxu1 %v3498_v53  ;;  %v2721_v53 = vld [vmem:[%s3850_s8 + $0xf0] ss:$8 sps:$4 sm:$0xff]  }
 0x296   : > { %2530 = vmatprep.subr.bf16.mxu1 %v3504_v54  ;;  %v1303_v61 = vadd.f32 %v1262_v58, %v3379_v5  ;;  %v1329_v54 = vld [vmem:[%s3849_s7] sm:$0x3] }
 0x297   : > { %v1264_v59 = vpop.permute.xlu1 %1263 }
 0x298   : > { %v1304_v57 = vadd.f32 %v1264_v59, %v3384_v8 }
 0x299   : > { %2546 = vmatpush1.bf16.msra.mxu1 %v3510_v16  ;;  %v3675_v16 = vrot.slane %v1329_v54, %v3254_v50 }
 0x29a   : > { %v1316_v60 = vpack.c.bf16 %v1304_v57, %v1303_v61  ;;  %2531 = vmatprep.subr.bf16.mxu1 %v3516_v17  ;;  %v3678_v17 = vrot.slane %v1329_v54, %v3259_v52 }
 0x29c   : > { %2383 = vmatmul.mubr.msk.bf16.gmra.mrb[44].mxu1 %vm1381_vm0, %v1316_v60 }
 0x29d   : > { %v1266_v62 = vpop.permute.xlu0 %1265  ;;  %1478 = vmatprep.mubr.bf16.mxu1 %v2917_v23  ;;  %2547 = vmatpush1.bf16.msra.mxu1 %v3522_v19 }
 0x29e   : > { %2532 = vmatprep.subr.bf16.mxu1 %v3528_v20  ;;  %v1305_v0 = vadd.f32 %v1266_v62, %v3393_v15 }
 0x29f   : > { %v1268_v63 = vpop.permute.xlu1 %1267 }
 0x2a0   : > { %v1306_v5 = vadd.f32 %v1268_v63, %v3398_v18 }
 0x2a1   : > { %2548 = vmatpush1.bf16.msra.mxu1 %v3534_v21 }
 0x2a2   : > { %v1317_v8 = vpack.c.bf16 %v1306_v5, %v1305_v0  ;;  %2533 = vmatprep.subr.bf16.mxu1 %v3540_v22 }
 0x2a4   : > { %2384 = vmatmul.mubr.msk.bf16.gmra.mrb[48].mxu1 %vm1381_vm0, %v1317_v8 }
 0x2a5   : > { %v1270_v1 = vpop.permute.xlu0 %1269  ;;  %1488 = vmatprep.mubr.bf16.mxu1 %v2917_v23  ;;  %2549 = vmatpush1.bf16.msra.mxu1 %v3546_v25 }
 0x2a6   : > { %2534 = vmatprep.subr.bf16.mxu1 %v3552_v26  ;;  %v1307_v4 = vadd.f32 %v1270_v1, %v3407_v30 }
 0x2a7   : > { %v1272_v3 = vpop.permute.xlu1 %1271 }
 0x2a8   : > { %v1308_v15 = vadd.f32 %v1272_v3, %v3412_v34 }
 0x2a9   : > { %2550 = vmatpush1.bf16.msra.mxu1 %v3558_v27 }
 0x2aa   : > { %v1318_v18 = vpack.c.bf16 %v1308_v15, %v1307_v4  ;;  %2535 = vmatprep.subr.bf16.mxu1 %v3564_v28 }
 0x2ac   : > { %2385 = vmatmul.mubr.msk.bf16.gmra.mrb[52].mxu1 %vm1381_vm0, %v1318_v18 }
 0x2ad   : > { %v1274_v6 = vpop.permute.xlu0 %1273  ;;  %1498 = vmatprep.mubr.bf16.mxu1 %v2917_v23  ;;  %2551 = vmatpush1.bf16.msra.mxu1 %v3570_v31 }
 0x2ae   : > { %2536 = vmatprep.subr.bf16.mxu1 %v3576_v32  ;;  %v1309_v10 = vadd.f32 %v1274_v6, %v3421_v44 }
 0x2af   : > { %v1276_v7 = vpop.permute.xlu1 %1275 }
 0x2b0   : > { %v1310_v30 = vadd.f32 %v1276_v7, %v3426_v48  ;;  %v2717_v48 = vld [vmem:[%s3850_s8 + $0xd4] ss:$8 sps:$4 sm:$0xff]  }
 0x2b1   : > { %2552 = vmatpush1.bf16.msra.mxu1 %v3582_v35  ;;  %1861 = vmatprep.subr.bf16.mxu0 %v2717_v48 }
 0x2b2   : > { %v1319_v34 = vpack.c.bf16 %v1310_v30, %v1309_v10  ;;  %2537 = vmatprep.subr.bf16.mxu1 %v3588_v36  ;;  %1862 = vmatpush1.bf16.msra.mxu0 %v2715_v14 }
 0x2b4   : > { %2386 = vmatmul.mubr.msk.bf16.gmra.mrb[56].mxu1 %vm1381_vm0, %v1319_v34 }
 0x2b5   : > { %v1278_v11 = vpop.permute.xlu0 %1277  ;;  %1508 = vmatprep.mubr.bf16.mxu1 %v2917_v23  ;;  %2553 = vmatpush1.bf16.msra.mxu1 %v3594_v37  ;;  %v2720_v23 = vld [vmem:[%s3850_s8 + $0xe4] ss:$8 sps:$4 sm:$0xff]  }
 0x2b6   : > { %v1311_v24 = vadd.f32 %v1278_v11, %v3448_v2  ;;  %2538 = vmatprep.subr.bf16.mxu1 %v2717_v48  ;;  %v2718_v2 = vld [vmem:[%s3850_s8 + $0xe0] ss:$8 sps:$4 sm:$0xff]   ;;  %1863 = vmatprep.subr.bf16.mxu0 %v2720_v23 }
 0x2b7   : > { %v1280_v12 = vpop.permute.xlu1 %1279  ;;  %1864 = vmatpush1.bf16.msra.mxu0 %v2718_v2 }
 0x2b8   : > { %v1312_v13 = vadd.f32 %v1280_v12, %v3465_v9  ;;  %v2723_v9 = vld [vmem:[%s3850_s8 + $0xf4] ss:$8 sps:$4 sm:$0xff]  }
 0x2b9   : > { %2554 = vmatpush1.bf16.msra.mxu1 %v2715_v14  ;;  %1865 = vmatprep.subr.bf16.mxu0 %v2723_v9 }
 0x2ba   : > { %v1320_v44 = vpack.c.bf16 %v1312_v13, %v1311_v24  ;;  %2539 = vmatprep.subr.bf16.mxu1 %v2720_v23 }
 0x2bb   : > { %1866 = vmatpush1.bf16.msra.mxu0 %v2721_v53 }
 0x2bc   : > { %2387 = vmatmul.mubr.msk.bf16.gmra.mrb[60].mxu1 %vm1381_vm0, %v1320_v44 }
 0x2bd   : > { %2555 = vmatpush1.bf16.msra.mxu1 %v2718_v2 }
 0x2be   : > { %2540 = vmatprep.subr.bf16.mxu1 %v2723_v9 }
 0x2c1   : > { %2556 = vmatpush1.bf16.msra.mxu1 %v2721_v53 }
 0x357   : > { %v1440_v19 = vpop.f32.mrb[32].mxu1 }
 0x358   : > { %v1441_v20 = vadd.f32 %v1440_v19, %v3675_v16  ;;  %v1442_v21 = vpop.f32.mrb[33].mxu1 }
 0x359   : > { %v1443_v22 = vadd.f32 %v1442_v21, %v3678_v17  ;;  %v1444_v25 = vpop.f32.mrb[34].mxu1 }
 0x35a   : > { %v1551_v26 = vmul.f32 0.01, %v1441_v20  ;;  %v1445_v27 = vadd.f32 %v1444_v25, %v3675_v16  ;;  %v1446_v28 = vpop.f32.mrb[35].mxu1  ;;  %vm1519_vm1 = vcmp.gt.f32.partialorder %v1441_v20, 0.0 }
 0x35b   : > { %v1552_v31 = vmul.f32 0.01, %v1443_v22  ;;  %v1447_v32 = vadd.f32 %v1446_v28, %v3678_v17  ;;  %vm1520_vm2 = vcmp.gt.f32.partialorder %v1443_v22, 0.0 }
 0x35c   : > { %vm1521_vm3 = vcmp.gt.f32.partialorder %v1445_v27, 0.0  ;;  %v1553_v35 = vmul.f32 0.01, %v1445_v27  ;;  %v1583_v37 = vsel %vm1519_vm1, %v1441_v20, %v1551_v26 }
 0x35d   : > { %vm1522_vm4 = vcmp.gt.f32.partialorder %v1447_v32, 0.0  ;;  %v1554_v36 = vmul.f32 0.01, %v1447_v32  ;;  %v1584_v42 = vsel %vm1520_vm2, %v1443_v22, %v1552_v31 }
 0x35e   : > { %v1585_v38 = vsel %vm1521_vm3, %v1445_v27, %v1553_v35 }
 0x35f   : > { %v1615_v39 = vpack.c.bf16 %v1585_v38, %v1583_v37  ;;  %v1450_v40 = vpop.f32.mrb[36].mxu1  ;;  %v1586_v43 = vsel %vm1522_vm4, %v1447_v32, %v1554_v36 }
 0x360   : > { %v1451_v46 = vadd.f32 %v1450_v40, %v3675_v16  ;;  %v1452_v47 = vpop.f32.mrb[37].mxu1  ;;  %v1616_v49 = vpack.c.bf16 %v1586_v43, %v1584_v42 }
 0x361   : > { %v1453_v51 = vadd.f32 %v1452_v47, %v3678_v17  ;;  %v1454_v29 = vpop.f32.mrb[38].mxu1 }
 0x362   : > { %v1555_v33 = vmul.f32 0.01, %v1451_v46  ;;  %v1455_v55 = vadd.f32 %v1454_v29, %v3675_v16  ;;  %v1456_v56 = vpop.f32.mrb[39].mxu1  ;;  %1867 = vmatprep.mubr.bf16.mxu0 %v1616_v49  ;;  %vm1523_vm5 = vcmp.gt.f32.partialorder %v1451_v46, 0.0 }
 0x363   : > { %v1556_v41 = vmul.f32 0.01, %v1453_v51  ;;  %v1457_v45 = vadd.f32 %v1456_v56, %v3678_v17  ;;  %1868 = vmatmul.mubr.bf16.vlgmr.msra.gmra.mrb[32].mxu0 %v1615_v39  ;;  %vm1524_vm6 = vcmp.gt.f32.partialorder %v1453_v51, 0.0 }
 0x364   : > { %vm1525_vm7 = vcmp.gt.f32.partialorder %v1455_v55, 0.0  ;;  %v1557_v58 = vmul.f32 0.01, %v1455_v55  ;;  %v1587_v61 = vsel %vm1523_vm5, %v1451_v46, %v1555_v33 }
 0x365   : > { %vm1526_vm8 = vcmp.gt.f32.partialorder %v1457_v45, 0.0  ;;  %v1558_v59 = vmul.f32 0.01, %v1457_v45  ;;  %v1588_v62 = vsel %vm1524_vm6, %v1453_v51, %v1556_v41 }
 0x366   : > { %v1589_v57 = vsel %vm1525_vm7, %v1455_v55, %v1557_v58 }
 0x367   : > { %v1460_v60 = vpop.f32.mrb[40].mxu1  ;;  %v1590_v63 = vsel %vm1526_vm8, %v1457_v45, %v1558_v59  ;;  %v1617_v0 = vpack.c.bf16 %v1589_v57, %v1587_v61 }
 0x368   : > { %v1461_v5 = vadd.f32 %v1460_v60, %v3675_v16  ;;  %v1462_v8 = vpop.f32.mrb[41].mxu1  ;;  %v1618_v1 = vpack.c.bf16 %v1590_v63, %v1588_v62 }
 0x369   : > { %v1463_v3 = vadd.f32 %v1462_v8, %v3678_v17  ;;  %v1464_v4 = vpop.f32.mrb[42].mxu1 }
 0x36a   : > { %v1559_v15 = vmul.f32 0.01, %v1461_v5  ;;  %v1465_v18 = vadd.f32 %v1464_v4, %v3675_v16  ;;  %v1466_v6 = vpop.f32.mrb[43].mxu1  ;;  %1877 = vmatprep.mubr.bf16.mxu0 %v1618_v1  ;;  %vm1527_vm9 = vcmp.gt.f32.partialorder %v1461_v5, 0.0 }
 0x36b   : > { %v1560_v7 = vmul.f32 0.01, %v1463_v3  ;;  %v1467_v10 = vadd.f32 %v1466_v6, %v3678_v17  ;;  %1878 = vmatmul.mubr.bf16.gmra.mrb[36].mxu0 %v1617_v0  ;;  %vm1528_vm10 = vcmp.gt.f32.partialorder %v1463_v3, 0.0 }
 0x36c   : > { %vm1529_vm11 = vcmp.gt.f32.partialorder %v1465_v18, 0.0  ;;  %v1561_v30 = vmul.f32 0.01, %v1465_v18  ;;  %v1591_v11 = vsel %vm1527_vm9, %v1461_v5, %v1559_v15 }
 0x36d   : > { %vm1530_vm12 = vcmp.gt.f32.partialorder %v1467_v10, 0.0  ;;  %v1562_v34 = vmul.f32 0.01, %v1467_v10  ;;  %v1592_v13 = vsel %vm1528_vm10, %v1463_v3, %v1560_v7 }
 0x36e   : > { %v1593_v12 = vsel %vm1529_vm11, %v1465_v18, %v1561_v30 }
 0x36f   : > { %v1470_v24 = vpop.f32.mrb[44].mxu1  ;;  %v1594_v44 = vsel %vm1530_vm12, %v1467_v10, %v1562_v34  ;;  %v1619_v48 = vpack.c.bf16 %v1593_v12, %v1591_v11 }
 0x370   : > { %v1471_v14 = vadd.f32 %v1470_v24, %v3675_v16  ;;  %v1472_v23 = vpop.f32.mrb[45].mxu1  ;;  %v1620_v2 = vpack.c.bf16 %v1594_v44, %v1592_v13 }
 0x371   : > { %v1473_v9 = vadd.f32 %v1472_v23, %v3678_v17  ;;  %v1474_v53 = vpop.f32.mrb[46].mxu1 }
 0x372   : > { %v1563_v54 = vmul.f32 0.01, %v1471_v14  ;;  %v1475_v19 = vadd.f32 %v1474_v53, %v3675_v16  ;;  %v1476_v20 = vpop.f32.mrb[47].mxu1  ;;  %1887 = vmatprep.mubr.bf16.mxu0 %v1620_v2  ;;  %vm1531_vm13 = vcmp.gt.f32.partialorder %v1471_v14, 0.0 }
 0x373   : > { %v1564_v21 = vmul.f32 0.01, %v1473_v9  ;;  %v1477_v22 = vadd.f32 %v1476_v20, %v3678_v17  ;;  %1888 = vmatmul.mubr.bf16.gmra.mrb[40].mxu0 %v1619_v48  ;;  %vm1532_vm14 = vcmp.gt.f32.partialorder %v1473_v9, 0.0 }
 0x374   : > { %vm1533_vm15 = vcmp.gt.f32.partialorder %v1475_v19, 0.0  ;;  %v1565_v25 = vmul.f32 0.01, %v1475_v19  ;;  %v1595_v27 = vsel %vm1531_vm13, %v1471_v14, %v1563_v54 }
 0x375   : > { %vm1534_vm0 = vcmp.gt.f32.partialorder %v1477_v22, 0.0  ;;  %v1566_v26 = vmul.f32 0.01, %v1477_v22  ;;  %v1596_v32 = vsel %vm1532_vm14, %v1473_v9, %v1564_v21 }
 0x376   : > { %v1597_v28 = vsel %vm1533_vm15, %v1475_v19, %v1565_v25 }
 0x377   : > { %v1480_v31 = vpop.f32.mrb[48].mxu1  ;;  %v1598_v35 = vsel %vm1534_vm0, %v1477_v22, %v1566_v26  ;;  %v1621_v36 = vpack.c.bf16 %v1597_v28, %v1595_v27 }
 0x378   : > { %v1481_v37 = vadd.f32 %v1480_v31, %v3675_v16  ;;  %v1482_v38 = vpop.f32.mrb[49].mxu1  ;;  %v1622_v39 = vpack.c.bf16 %v1598_v35, %v1596_v32 }
 0x379   : > { %v1483_v40 = vadd.f32 %v1482_v38, %v3678_v17  ;;  %v1484_v42 = vpop.f32.mrb[50].mxu1 }
 0x37a   : > { %v1567_v43 = vmul.f32 0.01, %v1481_v37  ;;  %v1485_v46 = vadd.f32 %v1484_v42, %v3675_v16  ;;  %v1486_v47 = vpop.f32.mrb[51].mxu1  ;;  %1897 = vmatprep.mubr.bf16.mxu0 %v1622_v39  ;;  %vm1535_vm1 = vcmp.gt.f32.partialorder %v1481_v37, 0.0 }
 0x37b   : > { %v1568_v49 = vmul.f32 0.01, %v1483_v40  ;;  %v1487_v51 = vadd.f32 %v1486_v47, %v3678_v17  ;;  %1898 = vmatmul.mubr.bf16.gmra.mrb[44].mxu0 %v1621_v36  ;;  %vm1536_vm2 = vcmp.gt.f32.partialorder %v1483_v40, 0.0 }
 0x37c   : > { %vm1537_vm3 = vcmp.gt.f32.partialorder %v1485_v46, 0.0  ;;  %v1569_v29 = vmul.f32 0.01, %v1485_v46  ;;  %v1599_v55 = vsel %vm1535_vm1, %v1481_v37, %v1567_v43 }
 0x37d   : > { %vm1538_vm4 = vcmp.gt.f32.partialorder %v1487_v51, 0.0  ;;  %v1570_v33 = vmul.f32 0.01, %v1487_v51  ;;  %v1600_v45 = vsel %vm1536_vm2, %v1483_v40, %v1568_v49 }
 0x37e   : > { %v1601_v56 = vsel %vm1537_vm3, %v1485_v46, %v1569_v29 }
 0x37f   : > { %v1490_v41 = vpop.f32.mrb[52].mxu1  ;;  %v1602_v58 = vsel %vm1538_vm4, %v1487_v51, %v1570_v33  ;;  %v1623_v59 = vpack.c.bf16 %v1601_v56, %v1599_v55 }
 0x380   : > { %v1491_v61 = vadd.f32 %v1490_v41, %v3675_v16  ;;  %v1492_v57 = vpop.f32.mrb[53].mxu1  ;;  %v1624_v60 = vpack.c.bf16 %v1602_v58, %v1600_v45 }
 0x381   : > { %v1493_v62 = vadd.f32 %v1492_v57, %v3678_v17  ;;  %v1494_v63 = vpop.f32.mrb[54].mxu1 }
 0x382   : > { %v1571_v0 = vmul.f32 0.01, %v1491_v61  ;;  %v1495_v5 = vadd.f32 %v1494_v63, %v3675_v16  ;;  %v1496_v8 = vpop.f32.mrb[55].mxu1  ;;  %1907 = vmatprep.mubr.bf16.mxu0 %v1624_v60  ;;  %vm1539_vm5 = vcmp.gt.f32.partialorder %v1491_v61, 0.0 }
 0x383   : > { %v1572_v1 = vmul.f32 0.01, %v1493_v62  ;;  %v1497_v3 = vadd.f32 %v1496_v8, %v3678_v17  ;;  %1908 = vmatmul.mubr.bf16.gmra.mrb[48].mxu0 %v1623_v59  ;;  %vm1540_vm6 = vcmp.gt.f32.partialorder %v1493_v62, 0.0 }
 0x384   : > { %vm1541_vm7 = vcmp.gt.f32.partialorder %v1495_v5, 0.0  ;;  %v1573_v4 = vmul.f32 0.01, %v1495_v5  ;;  %v1603_v18 = vsel %vm1539_vm5, %v1491_v61, %v1571_v0 }
 0x385   : > { %vm1542_vm8 = vcmp.gt.f32.partialorder %v1497_v3, 0.0  ;;  %v1574_v15 = vmul.f32 0.01, %v1497_v3  ;;  %v1604_v10 = vsel %vm1540_vm6, %v1493_v62, %v1572_v1 }
 0x386   : > { %v1605_v6 = vsel %vm1541_vm7, %v1495_v5, %v1573_v4 }
 0x387   : > { %v1500_v7 = vpop.f32.mrb[56].mxu1  ;;  %v1606_v30 = vsel %vm1542_vm8, %v1497_v3, %v1574_v15  ;;  %v1625_v34 = vpack.c.bf16 %v1605_v6, %v1603_v18 }
 0x388   : > { %v1501_v11 = vadd.f32 %v1500_v7, %v3675_v16  ;;  %v1502_v12 = vpop.f32.mrb[57].mxu1  ;;  %v1626_v24 = vpack.c.bf16 %v1606_v30, %v1604_v10 }
 0x389   : > { %v1503_v13 = vadd.f32 %v1502_v12, %v3678_v17  ;;  %v1504_v44 = vpop.f32.mrb[58].mxu1 }
 0x38a   : > { %v1575_v48 = vmul.f32 0.01, %v1501_v11  ;;  %v1505_v14 = vadd.f32 %v1504_v44, %v3675_v16  ;;  %v1506_v23 = vpop.f32.mrb[59].mxu1  ;;  %1917 = vmatprep.mubr.bf16.mxu0 %v1626_v24  ;;  %vm1543_vm9 = vcmp.gt.f32.partialorder %v1501_v11, 0.0 }
 0x38b   : > { %v1576_v2 = vmul.f32 0.01, %v1503_v13  ;;  %v1507_v9 = vadd.f32 %v1506_v23, %v3678_v17  ;;  %1918 = vmatmul.mubr.bf16.gmra.mrb[52].mxu0 %v1625_v34  ;;  %vm1544_vm10 = vcmp.gt.f32.partialorder %v1503_v13, 0.0 }
 0x38c   : > { %vm1545_vm11 = vcmp.gt.f32.partialorder %v1505_v14, 0.0  ;;  %v1577_v53 = vmul.f32 0.01, %v1505_v14  ;;  %v1607_v19 = vsel %vm1543_vm9, %v1501_v11, %v1575_v48 }
 0x38d   : > { %vm1546_vm12 = vcmp.gt.f32.partialorder %v1507_v9, 0.0  ;;  %v1578_v54 = vmul.f32 0.01, %v1507_v9  ;;  %v1608_v25 = vsel %vm1544_vm10, %v1503_v13, %v1576_v2 }
 0x38e   : > { %v1609_v20 = vsel %vm1545_vm11, %v1505_v14, %v1577_v53 }
 0x38f   : > { %v1627_v21 = vpack.c.bf16 %v1609_v20, %v1607_v19  ;;  %v1510_v22 = vpop.f32.mrb[60].mxu1  ;;  %v1610_v26 = vsel %vm1546_vm12, %v1507_v9, %v1578_v54 }
 0x390   : > { %v1511_v27 = vadd.f32 %v1510_v22, %v3675_v16  ;;  %v1512_v28 = vpop.f32.mrb[61].mxu1  ;;  %v1628_v31 = vpack.c.bf16 %v1610_v26, %v1608_v25 }
 0x391   : > { %v1513_v32 = vadd.f32 %v1512_v28, %v3678_v17  ;;  %v1514_v35 = vpop.f32.mrb[62].mxu1 }
 0x392   : > { %v1579_v36 = vmul.f32 0.01, %v1511_v27  ;;  %v1515_v37 = vadd.f32 %v1514_v35, %v3675_v16  ;;  %v1516_v38 = vpop.f32.mrb[63].mxu1  ;;  %1927 = vmatprep.mubr.bf16.mxu1 %v1628_v31  ;;  %vm1547_vm13 = vcmp.gt.f32.partialorder %v1511_v27, 0.0  ;;  %v1663_v16 = vld [vmem:[%s3851_s9] sm:$0x3] }
 0x393   : > { %v1580_v39 = vmul.f32 0.01, %v1513_v32  ;;  %v1517_v40 = vadd.f32 %v1516_v38, %v3678_v17  ;;  %1928 = vmatmul.mubr.bf16.vlgmr.msra.gmra.mrb[64].mxu1 %v1627_v21  ;;  %vm1548_vm14 = vcmp.gt.f32.partialorder %v1513_v32, 0.0  ;;  %v3716_v17 = vrot.slane %v1663_v16, %v3254_v50 }
 0x394   : > { %vm1549_vm15 = vcmp.gt.f32.partialorder %v1515_v37, 0.0  ;;  %v1581_v42 = vmul.f32 0.01, %v1515_v37  ;;  %v1611_v46 = vsel %vm1547_vm13, %v1511_v27, %v1579_v36  ;;  %v3719_v55 = vrot.slane %v1663_v16, %v3259_v52 }
 0x395   : > { %vm1550_vm0 = vcmp.gt.f32.partialorder %v1517_v40, 0.0  ;;  %v1582_v43 = vmul.f32 0.01, %v1517_v40  ;;  %v1612_v49 = vsel %vm1548_vm14, %v1513_v32, %v1580_v39 }
 0x396   : > { %v1613_v47 = vsel %vm1549_vm15, %v1515_v37, %v1581_v42 }
 0x397   : > { %v1614_v51 = vsel %vm1550_vm0, %v1517_v40, %v1582_v43  ;;  %v1629_v29 = vpack.c.bf16 %v1613_v47, %v1611_v46 }
 0x398   : > { %v1630_v33 = vpack.c.bf16 %v1614_v51, %v1612_v49 }
 0x39a   : > { %1937 = vmatprep.mubr.bf16.mxu1 %v1630_v33 }
 0x39b   : > { %1938 = vmatmul.mubr.bf16.gmra.mrb[68].mxu1 %v1629_v29 }
 0x436   : > { %v1869_v56 = vpop.f32.mrb[32].mxu0 }
 0x437   : > { %v1870_v41 = vadd.f32 %v1869_v56, %v3716_v17  ;;  %v1871_v45 = vpop.f32.mrb[33].mxu0 }
 0x438   : > { %v1872_v58 = vadd.f32 %v1871_v45, %v3719_v55  ;;  %v1873_v59 = vpop.f32.mrb[34].mxu0 }
 0x439   : > { %v2420_v61 = vmul.f32 -1.442695, %v1870_v41  ;;  %v1874_v57 = vadd.f32 %v1873_v59, %v3716_v17  ;;  %v1875_v60 = vpop.f32.mrb[35].mxu0 }
 0x43a   : > { %v2421_v62 = vmul.f32 -1.442695, %v1872_v58  ;;  %v1876_v63 = vadd.f32 %v1875_v60, %v3719_v55 }
 0x43b   : > { %2724 = vpow2.f32 %v2420_v61  ;;  %v2422_v50 = vmul.f32 -1.442695, %v1874_v57 }
 0x43c   : > { %2726 = vpow2.f32 %v2421_v62  ;;  %v2423_v0 = vmul.f32 -1.442695, %v1876_v63 }
 0x43d   : > { %2728 = vpow2.f32 %v2422_v50 }
 0x43e   : > { %2730 = vpow2.f32 %v2423_v0  ;;  %v1879_v52 = vpop.f32.mrb[36].mxu0 }
 0x43f   : > { %v1880_v5 = vadd.f32 %v1879_v52, %v3716_v17  ;;  %v1881_v8 = vpop.f32.mrb[37].mxu0 }
 0x440   : > { %v1882_v1 = vadd.f32 %v1881_v8, %v3719_v55  ;;  %v1883_v3 = vpop.f32.mrb[38].mxu0 }
 0x441   : > { %v2424_v4 = vmul.f32 -1.442695, %v1880_v5  ;;  %v1884_v15 = vadd.f32 %v1883_v3, %v3716_v17  ;;  %v1885_v18 = vpop.f32.mrb[39].mxu0 }
 0x442   : > { %v2425_v6 = vmul.f32 -1.442695, %v1882_v1  ;;  %v1886_v7 = vadd.f32 %v1885_v18, %v3719_v55 }
 0x443   : > { %2732 = vpow2.f32 %v2424_v4  ;;  %v2426_v10 = vmul.f32 -1.442695, %v1884_v15 }
 0x444   : > { %2734 = vpow2.f32 %v2425_v6  ;;  %v2427_v30 = vmul.f32 -1.442695, %v1886_v7 }
 0x445   : > { %v2725_v34 = vpop.eup %2724  ;;  %2736 = vpow2.f32 %v2426_v10 }
 0x446   : > { %v2727_v11 = vpop.eup %2726  ;;  %v2044_v12 = vadd.f32 1.0, %v2725_v34  ;;  %2738 = vpow2.f32 %v2427_v30  ;;  %v1889_v24 = vpop.f32.mrb[40].mxu0 }
 0x447   : > { %v2729_v13 = vpop.eup %2728  ;;  %v2045_v44 = vadd.f32 1.0, %v2727_v11  ;;  %v1890_v48 = vadd.f32 %v1889_v24, %v3716_v17  ;;  %v1891_v14 = vpop.f32.mrb[41].mxu0 }
 0x448   : > { %v2731_v23 = vpop.eup %2730  ;;  %2740 = vrcp.f32 %v2044_v12  ;;  %v2046_v2 = vadd.f32 1.0, %v2729_v13  ;;  %v1892_v9 = vadd.f32 %v1891_v14, %v3719_v55  ;;  %v1893_v53 = vpop.f32.mrb[42].mxu0 }
 0x449   : > { %2742 = vrcp.f32 %v2045_v44  ;;  %v2047_v54 = vadd.f32 1.0, %v2731_v23  ;;  %v2428_v19 = vmul.f32 -1.442695, %v1890_v48  ;;  %v1894_v20 = vadd.f32 %v1893_v53, %v3716_v17  ;;  %v1895_v21 = vpop.f32.mrb[43].mxu0 }
 0x44a   : > { %2744 = vrcp.f32 %v2046_v2  ;;  %v2429_v22 = vmul.f32 -1.442695, %v1892_v9  ;;  %v1896_v25 = vadd.f32 %v1895_v21, %v3719_v55 }
 0x44b   : > { %2746 = vrcp.f32 %v2047_v54  ;;  %v2430_v26 = vmul.f32 -1.442695, %v1894_v20 }
 0x44c   : > { %2748 = vpow2.f32 %v2428_v19  ;;  %v2431_v27 = vmul.f32 -1.442695, %v1896_v25 }
 0x44d   : > { %v2733_v28 = vpop.eup %2732  ;;  %2750 = vpow2.f32 %v2429_v22 }
 0x44e   : > { %v2735_v31 = vpop.eup %2734  ;;  %v2048_v32 = vadd.f32 1.0, %v2733_v28  ;;  %2752 = vpow2.f32 %v2430_v26  ;;  %v1899_v35 = vpop.f32.mrb[44].mxu0 }
 0x44f   : > { %v2737_v36 = vpop.eup %2736  ;;  %v2049_v37 = vadd.f32 1.0, %v2735_v31  ;;  %2754 = vpow2.f32 %v2431_v27  ;;  %v1900_v38 = vadd.f32 %v1899_v35, %v3716_v17  ;;  %v1901_v39 = vpop.f32.mrb[45].mxu0 }
 0x450   : > { %v2739_v40 = vpop.eup %2738  ;;  %2756 = vrcp.f32 %v2048_v32  ;;  %v2050_v42 = vadd.f32 1.0, %v2737_v36  ;;  %v1902_v43 = vadd.f32 %v1901_v39, %v3719_v55  ;;  %v1903_v46 = vpop.f32.mrb[46].mxu0 }
 0x451   : > { %2758 = vrcp.f32 %v2049_v37  ;;  %v2051_v47 = vadd.f32 1.0, %v2739_v40  ;;  %v2432_v49 = vmul.f32 -1.442695, %v1900_v38  ;;  %v1904_v51 = vadd.f32 %v1903_v46, %v3716_v17  ;;  %v1905_v29 = vpop.f32.mrb[47].mxu0 }
 0x452   : > { %v2741_v33 = vpop.eup %2740  ;;  %2760 = vrcp.f32 %v2050_v42  ;;  %v2433_v16 = vmul.f32 -1.442695, %v1902_v43  ;;  %v1906_v56 = vadd.f32 %v1905_v29, %v3719_v55 }
 0x453   : > { %v2743_v41 = vpop.eup %2742  ;;  %2140 = vst [vmem:[%s3740_s22] sm:$0xff] %v2741_v33  ;;  %2762 = vrcp.f32 %v2051_v47  ;;  %v2434_v45 = vmul.f32 -1.442695, %v1904_v51 }
 0x454   : > { %v2745_v58 = vpop.eup %2744  ;;  %2141 = vst [vmem:[%s3740_s22 + $0x8] sm:$0xff] %v2743_v41  ;;  %2764 = vpow2.f32 %v2432_v49  ;;  %v2435_v59 = vmul.f32 -1.442695, %v1906_v56 }
 0x455   : > { %v2747_v61 = vpop.eup %2746  ;;  %2142 = vst [vmem:[%s3740_s22 + $0x10] sm:$0xff] %v2745_v58  ;;  %2766 = vpow2.f32 %v2433_v16 }
 0x456   : > { %v2749_v57 = vpop.eup %2748  ;;  %2143 = vst [vmem:[%s3740_s22 + $0x18] sm:$0xff] %v2747_v61  ;;  %2768 = vpow2.f32 %v2434_v45  ;;  %v1909_v60 = vpop.f32.mrb[48].mxu0 }
 0x457   : > { %v2751_v62 = vpop.eup %2750  ;;  %v2052_v63 = vadd.f32 1.0, %v2749_v57  ;;  %2770 = vpow2.f32 %v2435_v59  ;;  %v1910_v50 = vadd.f32 %v1909_v60, %v3716_v17  ;;  %v1911_v0 = vpop.f32.mrb[49].mxu0 }
 0x458   : > { %v2753_v52 = vpop.eup %2752  ;;  %v2053_v5 = vadd.f32 1.0, %v2751_v62  ;;  %v1912_v8 = vadd.f32 %v1911_v0, %v3719_v55  ;;  %v1913_v1 = vpop.f32.mrb[50].mxu0 }
 0x459   : > { %v2755_v3 = vpop.eup %2754  ;;  %2772 = vrcp.f32 %v2052_v63  ;;  %v2054_v4 = vadd.f32 1.0, %v2753_v52  ;;  %v2436_v15 = vmul.f32 -1.442695, %v1910_v50  ;;  %v1914_v18 = vadd.f32 %v1913_v1, %v3716_v17  ;;  %v1915_v6 = vpop.f32.mrb[51].mxu0 }
 0x45a   : > { %v2757_v7 = vpop.eup %2756  ;;  %2774 = vrcp.f32 %v2053_v5  ;;  %v2055_v10 = vadd.f32 1.0, %v2755_v3  ;;  %v2437_v30 = vmul.f32 -1.442695, %v1912_v8  ;;  %v1916_v34 = vadd.f32 %v1915_v6, %v3719_v55 }
 0x45b   : > { %v2759_v11 = vpop.eup %2758  ;;  %2144 = vst [vmem:[%s3740_s22 + $0x20] sm:$0xff] %v2757_v7  ;;  %2776 = vrcp.f32 %v2054_v4  ;;  %v2438_v12 = vmul.f32 -1.442695, %v1914_v18 }
 0x45c   : > { %v2761_v24 = vpop.eup %2760  ;;  %2145 = vst [vmem:[%s3740_s22 + $0x28] sm:$0xff] %v2759_v11  ;;  %2778 = vrcp.f32 %v2055_v10  ;;  %v2439_v13 = vmul.f32 -1.442695, %v1916_v34 }
 0x45d   : > { %v2763_v44 = vpop.eup %2762  ;;  %2146 = vst [vmem:[%s3740_s22 + $0x30] sm:$0xff] %v2761_v24  ;;  %2780 = vpow2.f32 %v2436_v15 }
 0x45e   : > { %v2765_v48 = vpop.eup %2764  ;;  %2147 = vst [vmem:[%s3740_s22 + $0x38] sm:$0xff] %v2763_v44  ;;  %2782 = vpow2.f32 %v2437_v30  ;;  %v1919_v14 = vpop.f32.mrb[52].mxu0 }
 0x45f   : > { %v2767_v23 = vpop.eup %2766  ;;  %v2056_v2 = vadd.f32 1.0, %v2765_v48  ;;  %2784 = vpow2.f32 %v2438_v12  ;;  %v1920_v9 = vadd.f32 %v1919_v14, %v3716_v17  ;;  %v1921_v53 = vpop.f32.mrb[53].mxu0 }
 0x460   : > { %v2769_v54 = vpop.eup %2768  ;;  %v2057_v19 = vadd.f32 1.0, %v2767_v23  ;;  %2786 = vpow2.f32 %v2439_v13  ;;  %v1922_v20 = vadd.f32 %v1921_v53, %v3719_v55  ;;  %v1923_v21 = vpop.f32.mrb[54].mxu0 }
 0x461   : > { %v2771_v22 = vpop.eup %2770  ;;  %2788 = vrcp.f32 %v2056_v2  ;;  %v2058_v25 = vadd.f32 1.0, %v2769_v54  ;;  %v2440_v26 = vmul.f32 -1.442695, %v1920_v9  ;;  %v1924_v27 = vadd.f32 %v1923_v21, %v3716_v17  ;;  %v1925_v28 = vpop.f32.mrb[55].mxu0 }
 0x462   : > { %2790 = vrcp.f32 %v2057_v19  ;;  %v2059_v31 = vadd.f32 1.0, %v2771_v22  ;;  %v2441_v32 = vmul.f32 -1.442695, %v1922_v20  ;;  %v1926_v35 = vadd.f32 %v1925_v28, %v3719_v55 }
 0x463   : > { %v2773_v36 = vpop.eup %2772  ;;  %2792 = vrcp.f32 %v2058_v25  ;;  %v2442_v37 = vmul.f32 -1.442695, %v1924_v27 }
 0x464   : > { %v2775_v38 = vpop.eup %2774  ;;  %2148 = vst [vmem:[%s3740_s22 + $0x40] sm:$0xff] %v2773_v36  ;;  %2794 = vrcp.f32 %v2059_v31  ;;  %v2443_v39 = vmul.f32 -1.442695, %v1926_v35 }
 0x465   : > { %v2777_v40 = vpop.eup %2776  ;;  %2149 = vst [vmem:[%s3740_s22 + $0x48] sm:$0xff] %v2775_v38  ;;  %2796 = vpow2.f32 %v2440_v26 }
 0x466   : > { %v2779_v42 = vpop.eup %2778  ;;  %2150 = vst [vmem:[%s3740_s22 + $0x50] sm:$0xff] %v2777_v40  ;;  %2798 = vpow2.f32 %v2441_v32  ;;  %v1929_v43 = vpop.f32.mrb[64].mxu1 }
 0x467   : > { %v2781_v46 = vpop.eup %2780  ;;  %2151 = vst [vmem:[%s3740_s22 + $0x58] sm:$0xff] %v2779_v42  ;;  %2800 = vpow2.f32 %v2442_v37  ;;  %v1930_v47 = vadd.f32 %v1929_v43, %v3716_v17  ;;  %v1931_v49 = vpop.f32.mrb[65].mxu1 }
 0x468   : > { %v2783_v51 = vpop.eup %2782  ;;  %v2060_v29 = vadd.f32 1.0, %v2781_v46  ;;  %2802 = vpow2.f32 %v2443_v39  ;;  %v1932_v33 = vadd.f32 %v1931_v49, %v3719_v55  ;;  %v1933_v16 = vpop.f32.mrb[66].mxu1 }
 0x469   : > { %v2785_v56 = vpop.eup %2784  ;;  %v2061_v41 = vadd.f32 1.0, %v2783_v51  ;;  %v1934_v45 = vadd.f32 %v1933_v16, %v3716_v17  ;;  %v1935_v58 = vpop.f32.mrb[67].mxu1  ;;  %v2444_v57 = vmul.f32 -1.442695, %v1930_v47 }
 0x46a   : > { %v2787_v59 = vpop.eup %2786  ;;  %2804 = vrcp.f32 %v2060_v29  ;;  %v2062_v61 = vadd.f32 1.0, %v2785_v56  ;;  %v1936_v60 = vadd.f32 %v1935_v58, %v3719_v55  ;;  %v2445_v50 = vmul.f32 -1.442695, %v1932_v33 }
 0x46b   : > { %v2789_v62 = vpop.eup %2788  ;;  %2806 = vrcp.f32 %v2061_v41  ;;  %v2063_v63 = vadd.f32 1.0, %v2787_v59  ;;  %v2446_v52 = vmul.f32 -1.442695, %v1934_v45 }
 0x46c   : > { %v2791_v0 = vpop.eup %2790  ;;  %2152 = vst [vmem:[%s3740_s22 + $0x60] sm:$0xff] %v2789_v62  ;;  %2808 = vrcp.f32 %v2062_v61  ;;  %v2447_v8 = vmul.f32 -1.442695, %v1936_v60 }
 0x46d   : > { %v2793_v5 = vpop.eup %2792  ;;  %2153 = vst [vmem:[%s3740_s22 + $0x68] sm:$0xff] %v2791_v0  ;;  %2810 = vrcp.f32 %v2063_v63 }
 0x46e   : > { %v2795_v1 = vpop.eup %2794  ;;  %2154 = vst [vmem:[%s3740_s22 + $0x70] sm:$0xff] %v2793_v5  ;;  %2812 = vpow2.f32 %v2444_v57  ;;  %v1939_v3 = vpop.f32.mrb[68].mxu1 }
 0x46f   : > { %v2797_v4 = vpop.eup %2796  ;;  %2155 = vst [vmem:[%s3740_s22 + $0x78] sm:$0xff] %v2795_v1  ;;  %2814 = vpow2.f32 %v2445_v50  ;;  %v1940_v15 = vadd.f32 %v1939_v3, %v3716_v17  ;;  %v1941_v18 = vpop.f32.mrb[69].mxu1 }
 0x470   : > { %v2799_v6 = vpop.eup %2798  ;;  %v2064_v7 = vadd.f32 1.0, %v2797_v4  ;;  %2816 = vpow2.f32 %v2446_v52  ;;  %v1942_v10 = vadd.f32 %v1941_v18, %v3719_v55  ;;  %v1943_v30 = vpop.f32.mrb[70].mxu1 }
 0x471   : > { %v2801_v34 = vpop.eup %2800  ;;  %v2065_v11 = vadd.f32 1.0, %v2799_v6  ;;  %2818 = vpow2.f32 %v2447_v8  ;;  %v1944_v12 = vadd.f32 %v1943_v30, %v3716_v17  ;;  %v1945_v24 = vpop.f32.mrb[71].mxu1  ;;  %v2448_v48 = vmul.f32 -1.442695, %v1940_v15 }
 0x472   : > { %v2803_v13 = vpop.eup %2802  ;;  %2820 = vrcp.f32 %v2064_v7  ;;  %v2066_v44 = vadd.f32 1.0, %v2801_v34  ;;  %v1946_v14 = vadd.f32 %v1945_v24, %v3719_v55  ;;  %v2449_v2 = vmul.f32 -1.442695, %v1942_v10 }
 0x473   : > { %2822 = vrcp.f32 %v2065_v11  ;;  %v2067_v23 = vadd.f32 1.0, %v2803_v13  ;;  %v2450_v53 = vmul.f32 -1.442695, %v1944_v12 }
 0x474   : > { %v2805_v9 = vpop.eup %2804  ;;  %2824 = vrcp.f32 %v2066_v44  ;;  %v2451_v17 = vmul.f32 -1.442695, %v1946_v14 }
 0x475   : > { %v2807_v54 = vpop.eup %2806  ;;  %2156 = vst [vmem:[%s3740_s22 + $0x80] sm:$0xff] %v2805_v9  ;;  %2826 = vrcp.f32 %v2067_v23 }
 0x476   : > { %v2809_v19 = vpop.eup %2808  ;;  %2157 = vst [vmem:[%s3740_s22 + $0x88] sm:$0xff] %v2807_v54  ;;  %2828 = vpow2.f32 %v2448_v48 }
 0x477   : > { %v2811_v20 = vpop.eup %2810  ;;  %2158 = vst [vmem:[%s3740_s22 + $0x90] sm:$0xff] %v2809_v19  ;;  %2830 = vpow2.f32 %v2449_v2 }
 0x478   : > { %v2813_v21 = vpop.eup %2812  ;;  %2159 = vst [vmem:[%s3740_s22 + $0x98] sm:$0xff] %v2811_v20  ;;  %2832 = vpow2.f32 %v2450_v53 }
 0x479   : > { %v2815_v55 = vpop.eup %2814  ;;  %v2068_v22 = vadd.f32 1.0, %v2813_v21  ;;  %2834 = vpow2.f32 %v2451_v17 }
 0x47a   : > { %v2817_v25 = vpop.eup %2816  ;;  %v2069_v26 = vadd.f32 1.0, %v2815_v55 }
 0x47b   : > { %v2819_v27 = vpop.eup %2818  ;;  %2836 = vrcp.f32 %v2068_v22  ;;  %v2070_v28 = vadd.f32 1.0, %v2817_v25 }
 0x47c   : > { %v2821_v31 = vpop.eup %2820  ;;  %2838 = vrcp.f32 %v2069_v26  ;;  %v2071_v32 = vadd.f32 1.0, %v2819_v27 }
 0x47d   : > { %v2823_v35 = vpop.eup %2822  ;;  %2160 = vst [vmem:[%s3740_s22 + $0xa0] sm:$0xff] %v2821_v31  ;;  %2840 = vrcp.f32 %v2070_v28 }
 0x47e   : > { %v2825_v36 = vpop.eup %2824  ;;  %2161 = vst [vmem:[%s3740_s22 + $0xa8] sm:$0xff] %v2823_v35  ;;  %2842 = vrcp.f32 %v2071_v32 }
 0x47f   : > { %v2827_v37 = vpop.eup %2826  ;;  %2162 = vst [vmem:[%s3740_s22 + $0xb0] sm:$0xff] %v2825_v36 }
 0x480   : > { %v2829_v38 = vpop.eup %2828  ;;  %2163 = vst [vmem:[%s3740_s22 + $0xb8] sm:$0xff] %v2827_v37 }
 0x481   : > { %v2831_v39 = vpop.eup %2830  ;;  %v2072_v40 = vadd.f32 1.0, %v2829_v38 }
 0x482   : > { %v2833_v42 = vpop.eup %2832  ;;  %v2073_v43 = vadd.f32 1.0, %v2831_v39 }
 0x483   : > { %v2835_v46 = vpop.eup %2834  ;;  %2844 = vrcp.f32 %v2072_v40  ;;  %v2074_v47 = vadd.f32 1.0, %v2833_v42 }
 0x484   : > { %2846 = vrcp.f32 %v2073_v43  ;;  %v2075_v49 = vadd.f32 1.0, %v2835_v46 }
 0x485   : > { %v2837_v51 = vpop.eup %2836  ;;  %2848 = vrcp.f32 %v2074_v47 }
 0x486   : > { %v2839_v29 = vpop.eup %2838  ;;  %2164 = vst [vmem:[%s3740_s22 + $0xc0] sm:$0xff] %v2837_v51  ;;  %2850 = vrcp.f32 %v2075_v49 }
 0x487   : > { %v2841_v33 = vpop.eup %2840  ;;  %2165 = vst [vmem:[%s3740_s22 + $0xc8] sm:$0xff] %v2839_v29 }
 0x488   : > { %v2843_v16 = vpop.eup %2842  ;;  %2166 = vst [vmem:[%s3740_s22 + $0xd0] sm:$0xff] %v2841_v33 }
 0x489   : > { %2167 = vst [vmem:[%s3740_s22 + $0xd8] sm:$0xff] %v2843_v16 }
 0x48d   : > { %v2845_v56 = vpop.eup %2844 }
 0x48e   : > { %v2847_v41 = vpop.eup %2846  ;;  %2168 = vst [vmem:[%s3740_s22 + $0xe0] sm:$0xff] %v2845_v56 }
 0x48f   : > { %v2849_v45 = vpop.eup %2848  ;;  %2169 = vst [vmem:[%s3740_s22 + $0xe8] sm:$0xff] %v2847_v41 }
 0x490   : > { %v2851_v58 = vpop.eup %2850  ;;  %2170 = vst [vmem:[%s3740_s22 + $0xf0] sm:$0xff] %v2849_v45 }
 0x491   : > { %2171 = vst [vmem:[%s3740_s22 + $0xf8] sm:$0xff] %v2851_v58 }
 0x492   : > { %2865 = shalt.err (!%p2862_p3)
}
 0x493   : > { %s2866_s14 = scalar_lea.hbm %s3792_s0, 4096  ;;  %s2870_s22 = scalar_lea.hbm %s3852_s10, 8192 }
 0x494   : > { %p2867_p4 = scmp.ne.s32.totalorder %s3792_s0, %s2866_s14  ;;  %p2871_p9 = scmp.lt.u32.totalorder %s3792_s0, %s3852_s10 }
 0x495   : > { %p2872_p10 = scmp.lt.u32.totalorder %s2870_s22, %s2866_s14  ;;  %p2874_p12 = scmp.lt.u32.totalorder %s2866_s14, %s3792_s0 }
 0x496   : > { %p2868_p7 = pnand %p2867_p4, %p3019_p5 }
 0x497   : > { %p2873_p11 = por %p2872_p10, %p2871_p9 }
 0x498   : > { %p2869_p8 = pneg %p2868_p7 }
 0x499   : > { %p2875_p13 = por %p2874_p12, %p2873_p11 }
 0x49b   : > { %p2876_p0 = pnand %p2875_p13, %p2869_p8 }
 0x49d   : > { %2879 = shalt.err (!%p2876_p0)
}
 0x49e   : > { %s2919_s30 = smov 256   ;;  %s2920_s29 = smov 16  }
 0x49f   : > { %2557 = dma.vmem_to_hbm [thread:$0]  (%p3019_p5), %s3794_s25, 4096, %s3792_s0, %s3801_s21, %s2919_s30, %s2919_s30, %s2920_s29  }
 0x4a0 PF: > { %p2563_p1 = scmp.ge.s32.totalorder %s2914_s20, 2  ;;  %s2227_s16 = sand.u32 1, %s2902_s17  }
 0x4a1   : > { %s2228_s26 = scalar_lea.sflag [#allocation3], %s2227_s16 }
 0x4a2   : > { %p2560_p2 = pnand %p2563_p1, %p3023_p6 }
 0x4a4   : > { %2897 = dma.done.wait (!%p2560_p2), %s2228_s26, 4096  }
 0x4a5   : > { %2899 = vsyncadd (!%p2560_p2), %s2228_s26, 4294963200  ;;  %s3861_s13 = sld [smem:[#allocation5_spill]]  ;;  %s3862_s19 = sld [smem:[#allocation6_spill]] }
 0x4a6   : > { %p22_p3 = scmp.ge.s32.totalorder %s3006_s23, 4   ;;  %s3863_s17 = smov %s2906_s18 }
 0x4a7   : > { %s3865_s20 = smov %s3006_s23 }
 0x4a8   :  { %24 = sbr.rel (!%p22_p3) target bundleno = 5 (0x5), region = 110 }
 0x4ab   : > { %s3864_s18 = smov %s3861_s13 }
 0x4af   :  { %2241 = vsyncpa [#allocation3], 1 }
 0x4b0   :  { %2243 = vsyncpa [#allocation3 + $0x1], 1 }

</bundles_post_ra>
